<compile_context>
chip_gen: v7x
topology: tpu7x:2x2x1
jax: 0.10.0
libtpu: 0.0.40
codegen_flags: <defaults>
</compile_context>

<pallas_src>
import math
import numpy as np
import jax
import jax.numpy as jnp
from jax.experimental import pallas as pl
from jax.experimental.pallas import tpu as pltpu

BN_EPS = 1e-5
_VMEM_BUDGET = 20 << 20   # per-step working-set budget (safe under v7x's 64 MiB VMEM)
_VMEM_LIMIT = 32 << 20    # raise v5e's 16 MiB default scoped-VMEM limit


# ---------------------------------------------------------------------------
# In-kernel math
# ---------------------------------------------------------------------------
def _gelu_erf(x):
    """Exact-style (erf-based) GELU, matching torch.nn.GELU().

    erf via Abramowitz & Stegun 7.1.26 (|err| < 1.5e-7); reciprocal (approx) and exp run on
    the EUP slot, keeping the VPU epilogue short.
    """
    a1, a2, a3, a4, a5 = 0.254829592, -0.284496736, 1.421413741, -1.453152027, 1.061405429
    p = 0.3275911
    u = x * 0.7071067811865476
    z = jnp.abs(u)
    t = pl.reciprocal(1.0 + p * z, approx=True)
    poly = ((((a5 * t + a4) * t + a3) * t + a2) * t + a1) * t
    e = 1.0 - poly * jnp.exp(-z * z)
    erf = jnp.where(u >= 0.0, e, -e)
    return 0.5 * x * (1.0 + erf)


# ---------------------------------------------------------------------------
# Pallas kernel: fused (deconv-as-matmul) + folded BN + GELU
# ---------------------------------------------------------------------------
def _deconv_bn_gelu_kernel(a_ref, x_ref, shift_ref, o_ref):
    # a_ref:     (4*Cout, Cin)      bf16, BN scale folded into rows
    # x_ref:     (Cin, block_hw)    f32, one batch / one spatial tile (cast here -> no
    #                               separate XLA cast pass over the input)
    # shift_ref: (4*Cout, 1)        f32, conv bias + BN shift
    # o_ref:     (4*Cout, block_hw) bf16, lane-dense
    x = x_ref[...].astype(jnp.bfloat16)
    y = jnp.dot(a_ref[...], x, preferred_element_type=jnp.float32)
    y = y + shift_ref[...]
    o_ref[...] = _gelu_erf(y).astype(o_ref.dtype)


# ---------------------------------------------------------------------------
# Tile-size selection (VMEM budgeted, 128-aligned, pad-free when possible)
# ---------------------------------------------------------------------------
def _pick_block_hw(batch, hw, cin, n_rows, budget_bytes):
    """Largest lane tile that (a) is the full H*W extent or a 128-multiple divisor of it
    (BlockSpec last-dim rule, no jnp.pad pass), and (b) fits `budget_bytes` with
    double-buffered f32-in / bf16-out tiles plus resident weights."""
    per_elem = 2 * 4 * cin + 2 * 2 * n_rows                   # dbl-buffered in(f32)+out(bf16)
    resident = 2 * 2 * n_rows * cin + 4 * n_rows + (256 << 10)  # weights + shift + slack
    cap = max(128, (budget_bytes - resident) // per_elem)
    cap = min(cap, 4096)
    if hw <= cap:
        # full extent fits; for batch==1 split spatially so v7x's 2 TCs both get work
        if batch == 1 and hw % 256 == 0:
            return hw // 2, False
        return hw, False
    d = (cap // 128) * 128
    while d >= 128:
        if hw % d == 0:
            return d, False
        d -= 128
    # No 128-aligned divisor fits -> padded ragged tail (rare; costs one extra input copy).
    return max(128, min(2048, (cap // 128) * 128)), True


# ---------------------------------------------------------------------------
# Forward
# ---------------------------------------------------------------------------
def upblock_forward(x_nchw, params, *, out_dtype=jnp.float32,
                    vmem_budget_bytes=_VMEM_BUDGET):
    """UpBlock forward: ConvTranspose2d(dim -> dim//2, k=2, s=2) + BN(eval) + GELU.

    x_nchw: (B, Cin, H, W) float32.  Returns (B, Cin//2, 2H, 2W) `out_dtype` (NCHW).
    """
    B, Cin, H, W = x_nchw.shape
    w, b, bn = params["w"], params["b"], params["bn"]          # w: (Cin, Cout, 2, 2)
    Cout = w.shape[1]
    N = 4 * Cout                                               # rows ordered (co, kh, kw)
    HW = H * W

    block_hw, need_pad = _pick_block_hw(B, HW, Cin, N, vmem_budget_bytes)

    # ---- fold conv bias + BatchNorm(eval) into per-row scale/shift ----
    scale_c = bn["gamma"] * jax.lax.rsqrt(bn["var"] + BN_EPS)          # (Cout,)
    shift_c = (b - bn["mean"]) * scale_c + bn["beta"]                  # (Cout,)
    a_rows = jnp.transpose(w, (1, 2, 3, 0)).reshape(N, Cin)            # (co,kh,kw, ci)
    a_fold = (a_rows * jnp.repeat(scale_c, 4)[:, None]).astype(jnp.bfloat16)
    shift = jnp.repeat(shift_c, 4)[:, None].astype(jnp.float32)        # (N, 1)

    # ---- NCHW-native activations: (B, Cin, H*W), lanes = spatial (free f32 view) ----
    x3 = x_nchw.reshape(B, Cin, HW)
    HWp = HW
    if need_pad:
        HWp = block_hw * pl.cdiv(HW, block_hw)
        x3 = jnp.pad(x3, ((0, 0), (0, 0), (0, HWp - HW)))

    grid = (B, HWp // block_hw)
    y = pl.pallas_call(
        _deconv_bn_gelu_kernel,
        out_shape=jax.ShapeDtypeStruct((B, N, HWp), jnp.bfloat16),
        grid_spec=pltpu.PrefetchScalarGridSpec(
            num_scalar_prefetch=0,
            grid=grid,
            in_specs=[
                pl.BlockSpec((N, Cin), lambda bb, j: (0, 0)),             # resident weights
                pl.BlockSpec((None, Cin, block_hw), lambda bb, j: (bb, 0, j)),
                pl.BlockSpec((N, 1), lambda bb, j: (0, 0)),               # resident shift
            ],
            out_specs=pl.BlockSpec((None, N, block_hw), lambda bb, j: (bb, 0, j)),
        ),
        compiler_params=pltpu.CompilerParams(
            dimension_semantics=("parallel", "parallel"),
            vmem_limit_bytes=_VMEM_LIMIT,
        ),
    )(a_fold, x3, shift)

    # ---- epilogue glue (XLA, bf16): drop any spatial padding + 2x2 pixel shuffle ----
    if need_pad:
        y = y[:, :, :HW]
    y = y.reshape(B, Cout, 2, 2, H, W)          # (b, co, kh, kw, h, w)
    y = jnp.transpose(y, (0, 1, 4, 2, 5, 3))    # (b, co, h, kh, w, kw)
    return y.reshape(B, Cout, 2 * H, 2 * W).astype(out_dtype)


# ---------------------------------------------------------------------------
# Pure-JAX reference (float32) for correctness checking
# ---------------------------------------------------------------------------
def upblock_ref(x, params):
    w, b, bn = params["w"], params["b"], params["bn"]
    y = jnp.einsum("bihw,iokl->bohkwl", x, w)              # (B, Cout, H, 2, W, 2)
    B, Cout, H, _, W, _ = y.shape
    y = y.reshape(B, Cout, 2 * H, 2 * W) + b[None, :, None, None]
    scale = bn["gamma"] / jnp.sqrt(bn["var"] + BN_EPS)
    y = (y - bn["mean"][None, :, None, None]) * scale[None, :, None, None] \
        + bn["beta"][None, :, None, None]
    return jax.nn.gelu(y, approximate=False)


# ---------------------------------------------------------------------------
# Deterministic parameter initialization (shapes follow nn.ConvTranspose2d / BatchNorm2d)
# ---------------------------------------------------------------------------
def init_params(key, dim):
    Cin, Cout = dim, dim // 2
    k1, k2, k3, k4, k5, k6 = jax.random.split(key, 6)
    return dict(
        w=jax.random.normal(k1, (Cin, Cout, 2, 2), jnp.float32) / math.sqrt(Cin * 4),
        b=0.05 * jax.random.normal(k2, (Cout,), jnp.float32),
        bn=dict(
            gamma=jax.random.uniform(k3, (Cout,), jnp.float32, 0.5, 1.5),
            beta=0.1 * jax.random.normal(k4, (Cout,), jnp.float32),
            mean=0.1 * jax.random.normal(k5, (Cout,), jnp.float32),
            var=jax.random.uniform(k6, (Cout,), jnp.float32, 0.5, 1.5),
        ),
    )


# ---------------------------------------------------------------------------
if __name__ == "__main__":
    B, dim, H, W = 2, 64, 16, 16                 # UpBlock(dim=64) on a 16x16 feature map
    key = jax.random.PRNGKey(0)
    kx, kp = jax.random.split(key)
    params = init_params(kp, dim)
    x = jax.random.normal(kx, (B, dim, H, W), jnp.float32)

    fwd = jax.jit(upblock_forward)
    out = jax.block_until_ready(fwd(x, params))
    assert out.shape == (B, dim // 2, 2 * H, 2 * W), out.shape
    assert bool(jnp.all(jnp.isfinite(out)))

    ref = jax.block_until_ready(jax.jit(upblock_ref)(x, params))
    np.testing.assert_allclose(np.asarray(out), np.asarray(ref), rtol=5e-2, atol=3e-2)

    print("KERNEL_OK")
</pallas_src>

<mosaic_0001>
module attributes {stable_mosaic.version = 11 : i64} {
  func.func @_deconv_bn_gelu_kernel(%arg0: i32, %arg1: i32, %arg2: memref<128x64xbf16, #tpu.memory_space<vmem>>, %arg3: memref<1x64x256xf32, #tpu.memory_space<vmem>>, %arg4: memref<128x1xf32, #tpu.memory_space<vmem>>, %arg5: memref<1x128x256xbf16, #tpu.memory_space<vmem>>) attributes {dimension_semantics = [#tpu.dimension_semantics<parallel>, #tpu.dimension_semantics<parallel>], iteration_bounds = array<i64: 2, 1>, scalar_prefetch = 0 : i64, scratch_operands = 0 : i64, tpu.core_type = #tpu.core_type<tc>, window_params = [{pipeline_mode = #tpu.pipeline_mode<synchronous>, transform_indices = @transform_0, window_bounds = array<i64: 128, 64>}, {transform_indices = @transform_1, window_bounds = array<i64: 1, 64, 256>}, {pipeline_mode = #tpu.pipeline_mode<synchronous>, transform_indices = @transform_2, window_bounds = array<i64: 128, 1>}, {transform_indices = @transform_3, window_bounds = array<i64: 1, 128, 256>}]} {
    %c0 = arith.constant 0 : index
    %c0_0 = arith.constant 0 : index
    %c0_1 = arith.constant 0 : index
    %0 = vector.load %arg3[%c0, %c0_0, %c0_1] : memref<1x64x256xf32, #tpu.memory_space<vmem>>, vector<1x64x256xf32>
    %1 = vector.shape_cast %0 : vector<1x64x256xf32> to vector<64x256xf32>
    %2 = arith.truncf %1 : vector<64x256xf32> to vector<64x256xbf16>
    %c0_2 = arith.constant 0 : index
    %c0_3 = arith.constant 0 : index
    %3 = vector.load %arg2[%c0_2, %c0_3] : memref<128x64xbf16, #tpu.memory_space<vmem>>, vector<128x64xbf16>
    %cst = arith.constant dense<0.000000e+00> : vector<128x256xf32>
    %4 = tpu.matmul %3, %2, %cst {dimension_numbers = #tpu.dot_dimension_numbers<[1], [0], [0], [1], [0, 0, 1, 1], [], []>} : vector<128x64xbf16>, vector<64x256xbf16>, vector<128x256xf32> -> vector<128x256xf32>
    %c0_4 = arith.constant 0 : index
    %c0_5 = arith.constant 0 : index
    %5 = vector.load %arg4[%c0_4, %c0_5] : memref<128x1xf32, #tpu.memory_space<vmem>>, vector<128x1xf32>
    %6 = vector.broadcast %5 : vector<128x1xf32> to vector<128x256xf32>
    %7 = arith.addf %4, %6 : vector<128x256xf32>
    %cst_6 = arith.constant 0.707106769 : f32
    %8 = vector.broadcast %cst_6 : f32 to vector<128x256xf32>
    %9 = arith.mulf %7, %8 : vector<128x256xf32>
    %10 = math.absf %9 : vector<128x256xf32>
    %cst_7 = arith.constant 0.327591091 : f32
    %11 = vector.broadcast %cst_7 : f32 to vector<128x256xf32>
    %12 = arith.mulf %11, %10 : vector<128x256xf32>
    %cst_8 = arith.constant 1.000000e+00 : f32
    %13 = vector.broadcast %cst_8 : f32 to vector<128x256xf32>
    %14 = arith.addf %13, %12 : vector<128x256xf32>
    %15 = tpu.reciprocal %14 {approx = true} : vector<128x256xf32> -> vector<128x256xf32>
    %cst_9 = arith.constant 1.06140542 : f32
    %16 = vector.broadcast %cst_9 : f32 to vector<128x256xf32>
    %17 = arith.mulf %16, %15 : vector<128x256xf32>
    %cst_10 = arith.constant -1.45315206 : f32
    %18 = vector.broadcast %cst_10 : f32 to vector<128x256xf32>
    %19 = arith.addf %17, %18 : vector<128x256xf32>
    %20 = arith.mulf %19, %15 : vector<128x256xf32>
    %cst_11 = arith.constant 1.42141378 : f32
    %21 = vector.broadcast %cst_11 : f32 to vector<128x256xf32>
    %22 = arith.addf %20, %21 : vector<128x256xf32>
    %23 = arith.mulf %22, %15 : vector<128x256xf32>
    %cst_12 = arith.constant -0.284496725 : f32
    %24 = vector.broadcast %cst_12 : f32 to vector<128x256xf32>
    %25 = arith.addf %23, %24 : vector<128x256xf32>
    %26 = arith.mulf %25, %15 : vector<128x256xf32>
    %cst_13 = arith.constant 0.254829586 : f32
    %27 = vector.broadcast %cst_13 : f32 to vector<128x256xf32>
    %28 = arith.addf %26, %27 : vector<128x256xf32>
    %29 = arith.mulf %28, %15 : vector<128x256xf32>
    %cst_14 = arith.constant 0.000000e+00 : f32
    %30 = vector.broadcast %cst_14 : f32 to vector<128x256xf32>
    %31 = arith.subf %30, %10 : vector<128x256xf32>
    %32 = arith.mulf %31, %10 : vector<128x256xf32>
    %33 = math.exp %32 : vector<128x256xf32>
    %34 = arith.mulf %29, %33 : vector<128x256xf32>
    %cst_15 = arith.constant 1.000000e+00 : f32
    %35 = vector.broadcast %cst_15 : f32 to vector<128x256xf32>
    %36 = arith.subf %35, %34 : vector<128x256xf32>
    %cst_16 = arith.constant 0.000000e+00 : f32
    %37 = vector.broadcast %cst_16 : f32 to vector<128x256xf32>
    %38 = arith.cmpf oge, %9, %37 : vector<128x256xf32>
    %cst_17 = arith.constant 0.000000e+00 : f32
    %39 = vector.broadcast %cst_17 : f32 to vector<128x256xf32>
    %40 = arith.subf %39, %36 : vector<128x256xf32>
    %41 = arith.select %38, %36, %40 : vector<128x256xi1>, vector<128x256xf32>
    %cst_18 = arith.constant 5.000000e-01 : f32
    %42 = vector.broadcast %cst_18 : f32 to vector<128x256xf32>
    %43 = arith.mulf %42, %7 : vector<128x256xf32>
    %cst_19 = arith.constant 1.000000e+00 : f32
    %44 = vector.broadcast %cst_19 : f32 to vector<128x256xf32>
    %45 = arith.addf %44, %41 : vector<128x256xf32>
    %46 = arith.mulf %43, %45 : vector<128x256xf32>
    %47 = arith.truncf %46 : vector<128x256xf32> to vector<128x256xbf16>
    %c0_20 = arith.constant 0 : index
    %c0_21 = arith.constant 0 : index
    %c0_22 = arith.constant 0 : index
    %48 = vector.load %arg5[%c0_20, %c0_21, %c0_22] : memref<1x128x256xbf16, #tpu.memory_space<vmem>>, vector<1x128x256xbf16>
    %49 = vector.shape_cast %48 : vector<1x128x256xbf16> to vector<128x256xbf16>
    %50 = vector.shape_cast %47 : vector<128x256xbf16> to vector<1x128x256xbf16>
    tpu.vector_store %arg5[%c0_20, %c0_21, %c0_22], %50 {strides = array<i32>} : memref<1x128x256xbf16, #tpu.memory_space<vmem>>, vector<1x128x256xbf16>,
    return
  }
  func.func @transform_0(%arg0: i32, %arg1: i32) -> (i32, i32) {
    %c0_i32 = arith.constant 0 : i32
    %c0_i32_0 = arith.constant 0 : i32
    %c0_i32_1 = arith.constant 0 : i32
    return %c0_i32, %c0_i32_0 : i32, i32
  }
  func.func @transform_1(%arg0: i32, %arg1: i32) -> (i32, i32, i32) {
    %c0_i32 = arith.constant 0 : i32
    %c0_i32_0 = arith.constant 0 : i32
    return %arg0, %c0_i32, %arg1 : i32, i32, i32
  }
  func.func @transform_2(%arg0: i32, %arg1: i32) -> (i32, i32) {
    %c0_i32 = arith.constant 0 : i32
    %c0_i32_0 = arith.constant 0 : i32
    %c0_i32_1 = arith.constant 0 : i32
    return %c0_i32, %c0_i32_0 : i32, i32
  }
  func.func @transform_3(%arg0: i32, %arg1: i32) -> (i32, i32, i32) {
    %c0_i32 = arith.constant 0 : i32
    %c0_i32_0 = arith.constant 0 : i32
    return %arg0, %c0_i32, %arg1 : i32, i32, i32
  }
}

</mosaic_0001>

<bundles_post_ra>
// kernel: mul.9
= control target key start
LH: loop header
LB: loop body
LE: loop exit
PB: predicated region body
PF: predicated region fallthrough
CT: control target
= control target key end

     0   :  { %s259_s10 = smov 124   ;;  %s260_s11 = smov 116   ;;  %vm3_vm0 = vcmask 31744   ;;  %vm9_vm1 = vcmask 1048544   ;;  %vm15_vm2 = vcmask 1015744   ;;  %vm21_vm3 = vcmask 982944   ;;  %s399_s0 = inlined_call_operand.vmem [shape: f32[32,4], index: 0, kind: input, shape index: {}]   ;;  %s400_s1 = inlined_call_operand.vmem [shape: f32[128], index: 1, kind: output, shape index: {}]  }
   0x1   :  { %v197_v0 = vld [vmem:[%s399_s0 + $0x1f] sm:$0x1]   ;;  %v199_v1 = vld [vmem:[%s399_s0 + $0x1d] sm:$0x1]   ;;  %v198_v2 = vld [vmem:[%s399_s0 + $0x1e] sm:$0x1]  }
   0x2   :  { %7 = vrot.lane.b32.xlu0 %v197_v0, %s259_s10  ;;  %19 = vrot.lane.b32.xlu1 %v199_v1, %s260_s11  ;;  %v200_v3 = vld [vmem:[%s399_s0 + $0x1c] sm:$0x1]   ;;  %s261_s16 = smov 120   ;;  %s262_s17 = smov 112   ;;  %v201_v4 = vld [vmem:[%s399_s0 + $0x1b] sm:$0x1]  }
   0x3   :  { %v202_v5 = vld [vmem:[%s399_s0 + $0x1a] sm:$0x1]   ;;  %s263_s22 = smov 108   ;;  %s264_s23 = smov 104   ;;  %v203_v6 = vld [vmem:[%s399_s0 + $0x19] sm:$0x1]  }
   0x4   :  { %v204_v7 = vld [vmem:[%s399_s0 + $0x18] sm:$0x1]   ;;  %s265_s28 = smov 100   ;;  %s266_s29 = smov 96   ;;  %v205_v8 = vld [vmem:[%s399_s0 + $0x17] sm:$0x1]  }
   0x5   :  { %v206_v9 = vld [vmem:[%s399_s0 + $0x16] sm:$0x1]   ;;  %v2_v10 = vld [vmem:[%s399_s0] sm:$0x1]   ;;  %s267_s7 = smov 92   ;;  %s268_s8 = smov 88  }
   0x6   :  { %13 = vrot.lane.b32.xlu0 %v198_v2, %s261_s16  ;;  %25 = vrot.lane.b32.xlu1 %v200_v3, %s262_s17  ;;  %4 = vst.msk [vmem:[#allocation0] sm:$0x1] %vm3_vm0, %v2_v10   ;;  %v207_v11 = vld [vmem:[%s399_s0 + $0x15] sm:$0x1]   ;;  %v208_v12 = vld [vmem:[%s399_s0 + $0x14] sm:$0x1]  }
   0x7   :  { %s269_s13 = smov 84   ;;  %s270_s14 = smov 80   ;;  %v209_v13 = vld [vmem:[%s399_s0 + $0x13] sm:$0x1]   ;;  %v210_v14 = vld [vmem:[%s399_s0 + $0x12] sm:$0x1]  }
   0x8   :  { %s271_s19 = smov 76   ;;  %s272_s20 = smov 72   ;;  %v211_v15 = vld [vmem:[%s399_s0 + $0x11] sm:$0x1]   ;;  %v212_v16 = vld [vmem:[%s399_s0 + $0x10] sm:$0x1]  }
   0x9   :  { %s273_s25 = smov 68   ;;  %s274_s26 = smov 64   ;;  %v213_v17 = vld [vmem:[%s399_s0 + $0xf] sm:$0x1]   ;;  %v214_v18 = vld [vmem:[%s399_s0 + $0xe] sm:$0x1]  }
   0xa   :  { %31 = vrot.lane.b32.xlu0 %v201_v4, %s263_s22  ;;  %37 = vrot.lane.b32.xlu1 %v202_v5, %s264_s23  ;;  %s275_s2 = smov 60   ;;  %s276_s3 = smov 56   ;;  %v215_v19 = vld [vmem:[%s399_s0 + $0xd] sm:$0x1]   ;;  %v216_v20 = vld [vmem:[%s399_s0 + $0xc] sm:$0x1]  }
   0xb   :  { %s278_s9 = smov 48   ;;  %v217_v21 = vld [vmem:[%s399_s0 + $0xb] sm:$0x1]   ;;  %v218_v22 = vld [vmem:[%s399_s0 + $0xa] sm:$0x1]   ;;  %s280_s15 = smov 40  }
   0xc   :  { %v219_v23 = vld [vmem:[%s399_s0 + $0x9] sm:$0x1]   ;;  %v220_v24 = vld [vmem:[%s399_s0 + $0x8] sm:$0x1]   ;;  %s282_s21 = smov 32   ;;  %s284_s27 = smov 24  }
   0xd   :  { %v221_v25 = vld [vmem:[%s399_s0 + $0x7] sm:$0x1]   ;;  %v222_v26 = vld [vmem:[%s399_s0 + $0x6] sm:$0x1]   ;;  %v223_v27 = vld [vmem:[%s399_s0 + $0x5] sm:$0x1]  }
   0xe   :  { %43 = vrot.lane.b32.xlu0 %v203_v6, %s265_s28  ;;  %49 = vrot.lane.b32.xlu1 %v204_v7, %s266_s29  ;;  %v224_v28 = vld [vmem:[%s399_s0 + $0x4] sm:$0x1]   ;;  %s286_s4 = smov 16   ;;  %v225_v29 = vld [vmem:[%s399_s0 + $0x3] sm:$0x1]   ;;  %s288_s10 = smov 8  }
   0xf   :  { %v226_v30 = vld [vmem:[%s399_s0 + $0x2] sm:$0x1]   ;;  %v227_v31 = vld [vmem:[%s399_s0 + $0x1] sm:$0x1]   ;;  %s289_s0 = smov 4   ;;  %vm27_vm4 = vcmask 950144  }
  0x10   :  { %vm33_vm5 = vcmask 917344   ;;  %vm39_vm6 = vcmask 884544   ;;  %vm45_vm7 = vcmask 851744   ;;  %vm51_vm8 = vcmask 818944  }
  0x11   :  { %vm57_vm9 = vcmask 786144   ;;  %vm63_vm10 = vcmask 753344   ;;  %vm69_vm11 = vcmask 720544   ;;  %vm75_vm12 = vcmask 687744  }
  0x12   :  { %55 = vrot.lane.b32.xlu0 %v205_v8, %s267_s7  ;;  %61 = vrot.lane.b32.xlu1 %v206_v9, %s268_s8  ;;  %s277_s8 = smov 52   ;;  %vm81_vm13 = vcmask 654944   ;;  %vm87_vm14 = vcmask 622144   ;;  %vm93_vm15 = vcmask 589344   ;;  %vm99_vm0 = vcmask 556544  }
  0x16   :  { %67 = vrot.lane.b32.xlu0 %v207_v11, %s269_s13  ;;  %73 = vrot.lane.b32.xlu1 %v208_v12, %s270_s14  ;;  %s279_s14 = smov 44  }
  0x1a   :  { %79 = vrot.lane.b32.xlu0 %v209_v13, %s271_s19  ;;  %85 = vrot.lane.b32.xlu1 %v210_v14, %s272_s20  ;;  %s281_s20 = smov 36  }
  0x1e   :  { %91 = vrot.lane.b32.xlu0 %v211_v15, %s273_s25  ;;  %97 = vrot.lane.b32.xlu1 %v212_v16, %s274_s26  ;;  %s283_s26 = smov 28  }
  0x22   :  { %103 = vrot.lane.b32.xlu0 %v213_v17, %s275_s2  ;;  %109 = vrot.lane.b32.xlu1 %v214_v18, %s276_s3  ;;  %s285_s3 = smov 20  }
  0x26   :  { %115 = vrot.lane.b32.xlu0 %v215_v19, %s277_s8  ;;  %121 = vrot.lane.b32.xlu1 %v216_v20, %s278_s9  ;;  %s287_s9 = smov 12  }
  0x2a   :  { %127 = vrot.lane.b32.xlu0 %v217_v21, %s279_s14  ;;  %133 = vrot.lane.b32.xlu1 %v218_v22, %s280_s15 }
  0x2e   :  { %139 = vrot.lane.b32.xlu0 %v219_v23, %s281_s20  ;;  %145 = vrot.lane.b32.xlu1 %v220_v24, %s282_s21 }
  0x32   :  { %151 = vrot.lane.b32.xlu0 %v221_v25, %s283_s26  ;;  %157 = vrot.lane.b32.xlu1 %v222_v26, %s284_s27 }
  0x36   :  { %163 = vrot.lane.b32.xlu0 %v223_v27, %s285_s3  ;;  %169 = vrot.lane.b32.xlu1 %v224_v28, %s286_s4 }
  0x3a   :  { %175 = vrot.lane.b32.xlu0 %v225_v29, %s287_s9  ;;  %181 = vrot.lane.b32.xlu1 %v226_v30, %s288_s10 }
  0x3e   :  { %187 = vrot.lane.b32.xlu0 %v227_v31, %s289_s0 }
  0x74   :  { %v8_v32 = vpop.permute.xlu0 %7   ;;  %v20_v33 = vpop.permute.xlu1 %19  }
  0x75   :  { %10 = vst.msk [vmem:[#allocation0] sm:$0x1] %vm9_vm1, %v8_v32   ;;  %vm105_vm1 = vcmask 523744  }
  0x78   :  { %v14_v34 = vpop.permute.xlu0 %13   ;;  %v26_v35 = vpop.permute.xlu1 %25  }
  0x79   :  { %16 = vst.msk [vmem:[#allocation0] sm:$0x1] %vm15_vm2, %v14_v34   ;;  %vm111_vm2 = vcmask 490944  }
  0x7a   :  { %22 = vst.msk [vmem:[#allocation0] sm:$0x1] %vm21_vm3, %v20_v33   ;;  %vm117_vm3 = vcmask 458144  }
  0x7b   :  { %28 = vst.msk [vmem:[#allocation0] sm:$0x1] %vm27_vm4, %v26_v35   ;;  %vm123_vm4 = vcmask 425344  }
  0x7c   :  { %v32_v36 = vpop.permute.xlu0 %31   ;;  %v38_v37 = vpop.permute.xlu1 %37  }
  0x7d   :  { %34 = vst.msk [vmem:[#allocation0] sm:$0x1] %vm33_vm5, %v32_v36   ;;  %vm129_vm5 = vcmask 392544  }
  0x7e   :  { %40 = vst.msk [vmem:[#allocation0] sm:$0x1] %vm39_vm6, %v38_v37   ;;  %vm135_vm6 = vcmask 359744  }
  0x80   :  { %v44_v38 = vpop.permute.xlu0 %43   ;;  %v50_v39 = vpop.permute.xlu1 %49  }
  0x81   :  { %46 = vst.msk [vmem:[#allocation0] sm:$0x1] %vm45_vm7, %v44_v38   ;;  %vm141_vm7 = vcmask 326944  }
  0x82   :  { %52 = vst.msk [vmem:[#allocation0] sm:$0x1] %vm51_vm8, %v50_v39   ;;  %vm147_vm8 = vcmask 294144  }
  0x84   :  { %v56_v40 = vpop.permute.xlu0 %55   ;;  %v62_v41 = vpop.permute.xlu1 %61  }
  0x85   :  { %58 = vst.msk [vmem:[#allocation0] sm:$0x1] %vm57_vm9, %v56_v40   ;;  %vm153_vm9 = vcmask 261344  }
  0x86   :  { %64 = vst.msk [vmem:[#allocation0] sm:$0x1] %vm63_vm10, %v62_v41   ;;  %vm159_vm10 = vcmask 228544  }
  0x88   :  { %v68_v42 = vpop.permute.xlu0 %67   ;;  %v74_v43 = vpop.permute.xlu1 %73  }
  0x89   :  { %70 = vst.msk [vmem:[#allocation0] sm:$0x1] %vm69_vm11, %v68_v42   ;;  %vm165_vm11 = vcmask 195744  }
  0x8a   :  { %76 = vst.msk [vmem:[#allocation0] sm:$0x1] %vm75_vm12, %v74_v43   ;;  %vm171_vm12 = vcmask 162944  }
  0x8c   :  { %v80_v44 = vpop.permute.xlu0 %79   ;;  %v86_v45 = vpop.permute.xlu1 %85  }
  0x8d   :  { %82 = vst.msk [vmem:[#allocation0] sm:$0x1] %vm81_vm13, %v80_v44   ;;  %vm177_vm13 = vcmask 130144  }
  0x8e   :  { %88 = vst.msk [vmem:[#allocation0] sm:$0x1] %vm87_vm14, %v86_v45   ;;  %vm183_vm14 = vcmask 97344  }
  0x90   :  { %v92_v46 = vpop.permute.xlu0 %91   ;;  %v98_v47 = vpop.permute.xlu1 %97  }
  0x91   :  { %94 = vst.msk [vmem:[#allocation0] sm:$0x1] %vm93_vm15, %v92_v46   ;;  %vm189_vm15 = vcmask 64544  }
  0x92   :  { %100 = vst.msk [vmem:[#allocation0] sm:$0x1] %vm99_vm0, %v98_v47  }
  0x94   :  { %v104_v48 = vpop.permute.xlu0 %103   ;;  %v110_v49 = vpop.permute.xlu1 %109  }
  0x95   :  { %106 = vst.msk [vmem:[#allocation0] sm:$0x1] %vm105_vm1, %v104_v48  }
  0x96   :  { %112 = vst.msk [vmem:[#allocation0] sm:$0x1] %vm111_vm2, %v110_v49  }
  0x98   :  { %v116_v50 = vpop.permute.xlu0 %115   ;;  %v122_v51 = vpop.permute.xlu1 %121  }
  0x99   :  { %118 = vst.msk [vmem:[#allocation0] sm:$0x1] %vm117_vm3, %v116_v50  }
  0x9a   :  { %124 = vst.msk [vmem:[#allocation0] sm:$0x1] %vm123_vm4, %v122_v51  }
  0x9c   :  { %v128_v52 = vpop.permute.xlu0 %127   ;;  %v134_v53 = vpop.permute.xlu1 %133  }
  0x9d   :  { %130 = vst.msk [vmem:[#allocation0] sm:$0x1] %vm129_vm5, %v128_v52  }
  0x9e   :  { %136 = vst.msk [vmem:[#allocation0] sm:$0x1] %vm135_vm6, %v134_v53  }
  0xa0   :  { %v140_v54 = vpop.permute.xlu0 %139   ;;  %v146_v55 = vpop.permute.xlu1 %145  }
  0xa1   :  { %142 = vst.msk [vmem:[#allocation0] sm:$0x1] %vm141_vm7, %v140_v54  }
  0xa2   :  { %148 = vst.msk [vmem:[#allocation0] sm:$0x1] %vm147_vm8, %v146_v55  }
  0xa4   :  { %v152_v56 = vpop.permute.xlu0 %151   ;;  %v158_v57 = vpop.permute.xlu1 %157  }
  0xa5   :  { %154 = vst.msk [vmem:[#allocation0] sm:$0x1] %vm153_vm9, %v152_v56  }
  0xa6   :  { %160 = vst.msk [vmem:[#allocation0] sm:$0x1] %vm159_vm10, %v158_v57  }
  0xa8   :  { %v164_v58 = vpop.permute.xlu0 %163   ;;  %v170_v59 = vpop.permute.xlu1 %169  }
  0xa9   :  { %166 = vst.msk [vmem:[#allocation0] sm:$0x1] %vm165_vm11, %v164_v58  }
  0xaa   :  { %172 = vst.msk [vmem:[#allocation0] sm:$0x1] %vm171_vm12, %v170_v59  }
  0xac   :  { %v176_v60 = vpop.permute.xlu0 %175   ;;  %v182_v61 = vpop.permute.xlu1 %181  }
  0xad   :  { %178 = vst.msk [vmem:[#allocation0] sm:$0x1] %vm177_vm13, %v176_v60  }
  0xae   :  { %184 = vst.msk [vmem:[#allocation0] sm:$0x1] %vm183_vm14, %v182_v61  }
  0xb0   :  { %v188_v62 = vpop.permute.xlu0 %187  }
  0xb1   :  { %190 = vst.msk [vmem:[#allocation0] sm:$0x1] %vm189_vm15, %v188_v62  }
  0xb8   :  { %v194_v63 = vld [vmem:[#allocation0] sm:$0x1] }
  0xb9   :  { %196 = vst [vmem:[%s400_s1] sm:$0x1] %v194_v63 }

// kernel: upblock_forward.1
= control target key start
LH: loop header
LB: loop body
LE: loop exit
PB: predicated region body
PF: predicated region fallthrough
CT: control target
= control target key end

     0   :  { %s1833_s12 = smov 0   ;;  %s1835_s13 = smov 0   ;;  %s2699_s0 = inlined_call_operand.vmem [shape: bf16[128,64], index: 0, kind: input, shape index: {}]   ;;  %s2700_s1 = inlined_call_operand.vmem [shape: f32[2,64,256], index: 1, kind: input, shape index: {}]   ;;  %s2701_s2 = inlined_call_operand.vmem [shape: f32[128,1], index: 2, kind: input, shape index: {}]   ;;  %s2702_s3 = inlined_call_operand.vmem [shape: bf16[2,128,256], index: 3, kind: output, shape index: {}]  }
   0x1   :  { %s1837_s14 = smov 0  }
   0x2 LB: > { %s25_s15 = sadd.s32 1, %s1806_s13  ;;  %p1560_p0 = scmp.ge.s32.totalorder %s1810_s14, 1  ;;  %s1810_s14 = sphi %s1837_s14, %s13_s14   ;;  %s1806_s13 = sphi %s1835_s13, %s2737_s13   ;;  %s1802_s12 = sphi %s1833_s12, %s2736_s12  }
   0x3   : > { %p27_p1 = scmp.ge.s32.totalorder %s25_s15, 2  ;;  %p158_p2 = scmp.lt.s32.totalorder %s1810_s14, 3 }
   0x5   : > { %s2739_s15 = smov (%p27_p1, %s25_s15), 0  ;;  %p159_p3 = pnand %p1560_p0, %p158_p2 }
   0x7   : > { %162 = sbr.rel (%p159_p3) target bundleno = 488 (0x1e8), region = 32 }
   0xe   : > { %p191_p4 = scmp.lt.s32.totalorder %s1802_s12, 1  ;;  %v1812_v0 = vmov 0   ;;  %v253_v20 = vld [vmem:[%s2701_s2 + $0x10] sm:$0xff]  ;;  %v251_v22 = vld [vmem:[%s2701_s2] sm:$0xff]  ;;  %v254_v26 = vld [vmem:[%s2701_s2 + $0x18] sm:$0xff]  ;;  %vm387_vm0 = vcmask 523264  }
   0xf   : > { %444 = vmatprep.mubr.bf16.mxu0 %v1812_v0  ;;  %484 = vmatprep.mubr.bf16.mxu1 %v1812_v0  ;;  %v252_v27 = vld [vmem:[%s2701_s2 + $0x8] sm:$0xff]  ;;  %v1652_v29 = vld [vmem:[%s2699_s0] sm:$0xff]   ;;  %v258_v33 = vld [vmem:[%s2701_s2 + $0x38] sm:$0xff] }
  0x10   : > { %s2741_s12 = smov (!%p191_p4, %s1802_s12), 1  ;;  %1651 = vset.pattern.permute.xlu1 %v1812_v0  ;;  %1650 = vset.pattern.permute.xlu0 %v1812_v0  ;;  %v1653_v30 = vld [vmem:[%s2699_s0 + $0x20] sm:$0xff]   ;;  %v256_v31 = vld [vmem:[%s2701_s2 + $0x28] sm:$0xff]  ;;  %v257_v34 = vld [vmem:[%s2701_s2 + $0x30] sm:$0xff] }
  0x11   : > { %s1599_s16 = sshll.u32 %s2741_s12, 7  ;;  %279 = vperm.xlu1 %1651, %v253_v20   ;;  %269 = vperm.xlu0 %1650, %v251_v22   ;;  %v255_v32 = vld [vmem:[%s2701_s2 + $0x20] sm:$0xff]  ;;  %v1654_v35 = vld [vmem:[%s2699_s0 + $0x8] sm:$0xff]   ;;  %v262_v39 = vld [vmem:[%s2701_s2 + $0x58] sm:$0xff] }
  0x12   : > { %s1863_s19 = scalar_lea.vmem %s2700_s1, %s1599_s16  ;;  %v1655_v36 = vld [vmem:[%s2699_s0 + $0x28] sm:$0xff]   ;;  %v259_v38 = vld [vmem:[%s2701_s2 + $0x40] sm:$0xff]  ;;  %v261_v40 = vld [vmem:[%s2701_s2 + $0x50] sm:$0xff]  ;;  %s2186_s26 = scalar_lea.vmem %s2702_s3, %s1599_s16 }
  0x13   : > { %v212_v1 = vld [vmem:[%s1863_s19 + $0x8] sm:$0xff]  ;;  %v214_v2 = vld [vmem:[%s1863_s19 + $0x18] sm:$0xff]  ;;  %v211_v3 = vld [vmem:[%s1863_s19] sm:$0xff] }
  0x14   : > { %v228_v4 = vpack.c.bf16 %v214_v2, %v212_v1  ;;  %v213_v5 = vld [vmem:[%s1863_s19 + $0x10] sm:$0xff]  ;;  %v216_v6 = vld [vmem:[%s1863_s19 + $0x28] sm:$0xff]  ;;  %v218_v7 = vld [vmem:[%s1863_s19 + $0x38] sm:$0xff] }
  0x15   : > { %v227_v8 = vpack.c.bf16 %v213_v5, %v211_v3  ;;  %v230_v9 = vpack.c.bf16 %v218_v7, %v216_v6  ;;  %v215_v10 = vld [vmem:[%s1863_s19 + $0x20] sm:$0xff]  ;;  %v217_v11 = vld [vmem:[%s1863_s19 + $0x30] sm:$0xff]  ;;  %v220_v12 = vld [vmem:[%s1863_s19 + $0x48] sm:$0xff]  ;;  %284 = vperm.xlu1 %1651, %v254_v26   ;;  %274 = vperm.xlu0 %1650, %v252_v27  }
  0x16   : > { %412 = vmatprep.subr.bf16.mxu0 %v228_v4  ;;  %1617 = vmatprep.subr.bf16.mxu1 %v228_v4  ;;  %v222_v13 = vld [vmem:[%s1863_s19 + $0x58] sm:$0xff]  ;;  %v229_v14 = vpack.c.bf16 %v217_v11, %v215_v10  ;;  %v219_v15 = vld [vmem:[%s1863_s19 + $0x40] sm:$0xff]  ;;  %v221_v17 = vld [vmem:[%s1863_s19 + $0x50] sm:$0xff] }
  0x17   : > { %413 = vmatpush1.bf16.msra.mxu0 %v227_v8  ;;  %1621 = vmatpush1.bf16.msra.mxu1 %v227_v8  ;;  %v232_v16 = vpack.c.bf16 %v222_v13, %v220_v12  ;;  %v224_v18 = vld [vmem:[%s1863_s19 + $0x68] sm:$0xff]  ;;  %v226_v19 = vld [vmem:[%s1863_s19 + $0x78] sm:$0xff]  ;;  %v231_v21 = vpack.c.bf16 %v221_v17, %v219_v15  ;;  %v223_v24 = vld [vmem:[%s1863_s19 + $0x60] sm:$0xff] }
  0x18   : > { %414 = vmatprep.subr.bf16.mxu0 %v230_v9  ;;  %1618 = vmatprep.subr.bf16.mxu1 %v230_v9  ;;  %v234_v23 = vpack.c.bf16 %v226_v19, %v224_v18  ;;  %v225_v25 = vld [vmem:[%s1863_s19 + $0x70] sm:$0xff]  ;;  %v260_v37 = vld [vmem:[%s2701_s2 + $0x48] sm:$0xff]  ;;  %v263_v44 = vld [vmem:[%s2701_s2 + $0x60] sm:$0xff] }
  0x19   : > { %v233_v28 = vpack.c.bf16 %v225_v25, %v223_v24  ;;  %294 = vperm.xlu1 %1651, %v256_v31   ;;  %289 = vperm.xlu0 %1650, %v255_v32   ;;  %v1656_v41 = vld [vmem:[%s2699_s0 + $0x10] sm:$0xff]   ;;  %v264_v43 = vld [vmem:[%s2701_s2 + $0x68] sm:$0xff]  ;;  %v266_v45 = vld [vmem:[%s2701_s2 + $0x78] sm:$0xff] }
  0x1a   : > { %v1657_v42 = vld [vmem:[%s2699_s0 + $0x30] sm:$0xff]   ;;  %v1658_v47 = vld [vmem:[%s2699_s0 + $0x18] sm:$0xff]  }
  0x1b   : > { %415 = vmatpush1.bf16.msra.mxu0 %v229_v14  ;;  %1622 = vmatpush1.bf16.msra.mxu1 %v229_v14  ;;  %v265_v46 = vld [vmem:[%s2701_s2 + $0x70] sm:$0xff]  ;;  %v1659_v48 = vld [vmem:[%s2699_s0 + $0x38] sm:$0xff]  }
  0x1c   : > { %416 = vmatprep.subr.bf16.mxu0 %v232_v16  ;;  %1619 = vmatprep.subr.bf16.mxu1 %v232_v16 }
  0x1d   : > { %304 = vperm.xlu1 %1651, %v258_v33   ;;  %299 = vperm.xlu0 %1650, %v257_v34  }
  0x1f   : > { %417 = vmatpush1.bf16.msra.mxu0 %v231_v21  ;;  %1623 = vmatpush1.bf16.msra.mxu1 %v231_v21 }
  0x20   : > { %418 = vmatprep.subr.bf16.mxu0 %v234_v23  ;;  %1620 = vmatprep.subr.bf16.mxu1 %v234_v23 }
  0x21   : > { %314 = vperm.xlu1 %1651, %v260_v37   ;;  %309 = vperm.xlu0 %1650, %v259_v38  }
  0x23   : > { %419 = vmatpush1.bf16.msra.mxu0 %v233_v28  ;;  %1624 = vmatpush1.bf16.msra.mxu1 %v233_v28 }
  0x25   : > { %324 = vperm.xlu1 %1651, %v262_v39   ;;  %319 = vperm.xlu0 %1650, %v261_v40  }
  0x26   : > { %1573 = vmatmul.mubr.msk.bf16.vlgmr.msra.gmra.mrb[0].mxu0 %vm387_vm0, %v1652_v29  ;;  %1577 = vmatmul.mubr.msk.bf16.vlgmr.msra.gmra.mrb[0].mxu1 %vm387_vm0, %v1653_v30 }
  0x27   : > { %454 = vmatprep.mubr.bf16.mxu0 %v1812_v0  ;;  %494 = vmatprep.mubr.bf16.mxu1 %v1812_v0 }
  0x29   : > { %334 = vperm.xlu1 %1651, %v264_v43   ;;  %329 = vperm.xlu0 %1650, %v263_v44  }
  0x2d   : > { %344 = vperm.xlu1 %1651, %v266_v45   ;;  %339 = vperm.xlu0 %1650, %v265_v46  }
  0x2e   : > { %1574 = vmatmul.mubr.msk.bf16.gmra.mrb[4].mxu0 %vm387_vm0, %v1654_v35  ;;  %1578 = vmatmul.mubr.msk.bf16.gmra.mrb[4].mxu1 %vm387_vm0, %v1655_v36 }
  0x2f   : > { %464 = vmatprep.mubr.bf16.mxu0 %v1812_v0  ;;  %504 = vmatprep.mubr.bf16.mxu1 %v1812_v0 }
  0x36   : > { %1575 = vmatmul.mubr.msk.bf16.gmra.mrb[8].mxu0 %vm387_vm0, %v1656_v41  ;;  %1579 = vmatmul.mubr.msk.bf16.gmra.mrb[8].mxu1 %vm387_vm0, %v1657_v42 }
  0x37   : > { %474 = vmatprep.mubr.bf16.mxu0 %v1812_v0  ;;  %514 = vmatprep.mubr.bf16.mxu1 %v1812_v0 }
  0x3e   : > { %1576 = vmatmul.mubr.msk.bf16.gmra.mrb[12].mxu0 %vm387_vm0, %v1658_v47  ;;  %1580 = vmatmul.mubr.msk.bf16.gmra.mrb[12].mxu1 %vm387_vm0, %v1659_v48 }
  0x90   : > { %v270_v49 = vpop.permute.xlu0 %269  ;;  %v1967_v50 = vpop.permute.xlu1 %279 }
  0x94   : > { %v275_v51 = vpop.permute.xlu0 %274  ;;  %v1969_v52 = vpop.permute.xlu1 %284 }
  0x98   : > { %v1971_v53 = vpop.permute.xlu0 %289  ;;  %v1973_v54 = vpop.permute.xlu1 %294 }
  0x99   : > { %2706 = vst [vmem:[#allocation2_spill] sm:$0xff] %v1973_v54 }
  0x9c   : > { %v1975_v55 = vpop.permute.xlu0 %299  ;;  %v1977_v56 = vpop.permute.xlu1 %304 }
  0x9d   : > { %2707 = vst [vmem:[#allocation3_spill] sm:$0xff] %v1975_v55  ;;  %2708 = vst [vmem:[#allocation4_spill] sm:$0xff] %v1977_v56 }
  0xa0   : > { %v310_v57 = vpop.permute.xlu0 %309  ;;  %v315_v16 = vpop.permute.xlu1 %314 }
  0xf9   : > { %v446_v58 = vpop.f32.mrb[0].mxu0  ;;  %v486_v59 = vpop.f32.mrb[0].mxu1 }
  0xfa   : > { %v447_v60 = vadd.f32 %v446_v58, %v270_v49  ;;  %v1979_v61 = vadd.f32 %v486_v59, %v310_v57  ;;  %v448_v62 = vpop.f32.mrb[1].mxu0  ;;  %v488_v63 = vpop.f32.mrb[1].mxu1 }
  0xfb   : > { %v1981_v0 = vadd.f32 %v448_v62, %v270_v49  ;;  %v1983_v1 = vadd.f32 %v488_v63, %v310_v57  ;;  %v450_v2 = vpop.f32.mrb[2].mxu0  ;;  %v490_v3 = vpop.f32.mrb[2].mxu1 }
  0xfc   : > { %v1985_v4 = vmul.f32 0.70710677, %v447_v60  ;;  %v1988_v5 = vmul.f32 0.70710677, %v1979_v61  ;;  %v452_v22 = vpop.f32.mrb[3].mxu0  ;;  %v492_v23 = vpop.f32.mrb[3].mxu1  ;;  %v2004_v29 = vadd.f32 %v450_v2, %v275_v51  ;;  %v2010_v34 = vadd.f32 %v490_v3, %v315_v16 }
  0xfd   : > { %v1991_v6 = vmul.f32 0.70710677, %v1981_v0  ;;  %v1994_v7 = vmul.f32 0.70710677, %v1983_v1  ;;  %v2019_v39 = vadd.f32 %v452_v22, %v275_v51  ;;  %v2025_v43 = vmul.f32 0.5, %v447_v60 }
  0xfe   : > { %v557_v8 = vand.u32 2147483647, %v1985_v4  ;;  %v573_v9 = vand.u32 2147483647, %v1988_v5  ;;  %v2017_v38 = vmul.f32 0.70710677, %v2004_v29  ;;  %v2035_v57 = vadd.f32 %v492_v23, %v315_v16 }
  0xff   : > { %v558_v10 = vand.u32 2147483647, %v1991_v6  ;;  %v574_v11 = vand.u32 2147483647, %v1994_v7  ;;  %v2028_v44 = vmul.f32 0.70710677, %v2010_v34 }
 0x100   : > { %v589_v12 = vmul.f32 0.3275911, %v557_v8  ;;  %v973_v13 = vsub.f32 0.0, %v557_v8  ;;  %v605_v14 = vmul.f32 0.3275911, %v573_v9  ;;  %v989_v15 = vsub.f32 0.0, %v573_v9 }
 0x101   : > { %v590_v17 = vmul.f32 0.3275911, %v558_v10  ;;  %v974_v18 = vsub.f32 0.0, %v558_v10  ;;  %v606_v21 = vmul.f32 0.3275911, %v574_v11  ;;  %v2000_v25 = vpop.f32.mrb[4].mxu0 }
 0x102   : > { %v621_v19 = vadd.f32 1.0, %v589_v12  ;;  %v637_v20 = vadd.f32 1.0, %v605_v14  ;;  %v1005_v24 = vmul.f32 %v973_v13, %v557_v8  ;;  %v2002_v26 = vpop.f32.mrb[4].mxu1  ;;  %v1021_v27 = vmul.f32 %v989_v15, %v573_v9  ;;  %v2006_v30 = vpop.f32.mrb[5].mxu0 }
 0x103   : > { %v622_v28 = vadd.f32 1.0, %v590_v17  ;;  %v2008_v31 = vpop.f32.mrb[5].mxu1  ;;  %v1006_v32 = vmul.f32 %v974_v18, %v558_v10  ;;  %v990_v33 = vsub.f32 0.0, %v574_v11  ;;  %v2012_v35 = vpop.f32.mrb[6].mxu0  ;;  %v638_v37 = vadd.f32 1.0, %v606_v21 }
 0x104   : > { %1660 = vrcp.f32 %v621_v19  ;;  %v2014_v36 = vpop.f32.mrb[6].mxu1  ;;  %v2021_v40 = vpop.f32.mrb[7].mxu0  ;;  %v1037_v42 = vmul.f32 1.442695, %v1005_v24  ;;  %v1069_v45 = vmul.f32 1.442695, %v1021_v27 }
 0x105   : > { %1662 = vrcp.f32 %v637_v20  ;;  %v2023_v41 = vpop.f32.mrb[7].mxu1  ;;  %v559_v46 = vand.u32 2147483647, %v2017_v38  ;;  %v2032_v47 = vmul.f32 0.70710677, %v2019_v39  ;;  %v1022_v49 = vmul.f32 %v990_v33, %v574_v11 }
 0x106   : > { %1664 = vrcp.f32 %v622_v28  ;;  %v1039_v48 = vmul.f32 1.442695, %v1006_v32  ;;  %v575_v51 = vand.u32 2147483647, %v2028_v44  ;;  %v2045_v3 = vmul.f32 0.5, %v1979_v61 }
 0x107   : > { %1666 = vrcp.f32 %v638_v37  ;;  %v591_v60 = vmul.f32 0.3275911, %v559_v46  ;;  %v975_v62 = vsub.f32 0.0, %v559_v46  ;;  %v560_v63 = vand.u32 2147483647, %v2032_v47 }
 0x108   : > { %1668 = vpow2.f32 %v1037_v42  ;;  %v607_v8 = vmul.f32 0.3275911, %v575_v51  ;;  %v991_v9 = vsub.f32 0.0, %v575_v51  ;;  %v1071_v18 = vmul.f32 1.442695, %v1022_v49 }
 0x109   : > { %v2037_v58 = vpop.f32.mrb[8].mxu0  ;;  %v2039_v59 = vpop.f32.mrb[8].mxu1  ;;  %v623_v12 = vadd.f32 1.0, %v591_v60  ;;  %v1007_v13 = vmul.f32 %v975_v62, %v559_v46  ;;  %v592_v14 = vmul.f32 0.3275911, %v560_v63  ;;  %v976_v15 = vsub.f32 0.0, %v560_v63 }
 0x10a   : > { %2709 = vst [vmem:[#allocation5_spill] sm:$0xff] %v2037_v58  ;;  %2710 = vst [vmem:[#allocation6_spill] sm:$0xff] %v2039_v59  ;;  %v2042_v2 = vpop.f32.mrb[9].mxu0  ;;  %v2047_v10 = vpop.f32.mrb[9].mxu1  ;;  %1670 = vpow2.f32 %v1069_v45  ;;  %v639_v19 = vadd.f32 1.0, %v607_v8  ;;  %v2063_v22 = vmul.f32 0.5, %v1981_v0  ;;  %v1023_v23 = vmul.f32 %v991_v9, %v575_v51 }
 0x10b   : > { %2711 = vst [vmem:[#allocation7_spill] sm:$0xff] %v2042_v2  ;;  %2712 = vst [vmem:[#allocation8_spill] sm:$0xff] %v2047_v10  ;;  %v2049_v11 = vpop.f32.mrb[10].mxu0  ;;  %v2051_v16 = vpop.f32.mrb[10].mxu1  ;;  %v2056_v61 = vmul.f32 0.70710677, %v2035_v57  ;;  %1672 = vrcp.f32 %v623_v12  ;;  %v1008_v32 = vmul.f32 %v976_v15, %v560_v63  ;;  %v2079_v63 = vadd.f32 %v2000_v25, %v1967_v50 }
 0x10c   : > { %2713 = vst [vmem:[#allocation9_spill] sm:$0xff] %v2049_v11  ;;  %2714 = vst [vmem:[#allocation10_spill] sm:$0xff] %v2051_v16  ;;  %v2053_v17 = vpop.f32.mrb[11].mxu0  ;;  %v2058_v20 = vpop.f32.mrb[11].mxu1  ;;  %v624_v24 = vadd.f32 1.0, %v592_v14  ;;  %1674 = vrcp.f32 %v639_v19  ;;  %v2071_v42 = vmul.f32 0.5, %v1983_v1 }
 0x10d   : > { %2715 = vst [vmem:[#allocation11_spill] sm:$0xff] %v2053_v17  ;;  %2716 = vst [vmem:[#allocation12_spill] sm:$0xff] %v2058_v20  ;;  %v576_v33 = vand.u32 2147483647, %v2056_v61  ;;  %1676 = vpow2.f32 %v1039_v48  ;;  %v1041_v45 = vmul.f32 1.442695, %v1007_v13 }
 0x10e   : > { %v2060_v21 = vpop.eup %1660  ;;  %1678 = vpow2.f32 %v1071_v18  ;;  %v1073_v8 = vmul.f32 1.442695, %v1023_v23  ;;  %v1043_v12 = vmul.f32 1.442695, %v1008_v32  ;;  %v2089_v19 = vmul.f32 0.70710677, %v2079_v63 }
 0x10f   : > { %v2065_v27 = vpop.eup %1662  ;;  %v685_v28 = vmul.f32 1.0614054, %v2060_v21  ;;  %v608_v46 = vmul.f32 0.3275911, %v576_v33  ;;  %v992_v49 = vsub.f32 0.0, %v576_v33  ;;  %1680 = vrcp.f32 %v624_v24 }
 0x110   : > { %v701_v37 = vmul.f32 1.0614054, %v2065_v27  ;;  %v2075_v60 = vpop.eup %1664  ;;  %1682 = vpow2.f32 %v1041_v45  ;;  %vm1165_vm1 = vcmp.ge.f32.partialorder %v1985_v4, 0.0  ;;  %vm1181_vm2 = vcmp.ge.f32.partialorder %v1988_v5, 0.0 }
 0x111   : > { %v717_v0 = vadd.f32 -1.4531521, %v685_v28  ;;  %v2073_v51 = vpop.f32.mrb[12].mxu0  ;;  %v2081_v48 = vpop.f32.mrb[12].mxu1  ;;  %v686_v9 = vmul.f32 1.0614054, %v2075_v60  ;;  %v1024_v18 = vmul.f32 %v992_v49, %v576_v33 }
 0x112   : > { %2717 = vst [vmem:[#allocation13_spill] sm:$0xff] %v2073_v51  ;;  %v733_v62 = vadd.f32 -1.4531521, %v701_v37  ;;  %2718 = vst [vmem:[#allocation14_spill] sm:$0xff] %v2081_v48  ;;  %v640_v13 = vadd.f32 1.0, %v608_v46  ;;  %v2085_v14 = vpop.eup %1666  ;;  %v2091_v23 = vpop.f32.mrb[13].mxu0 }
 0x113   : > { %v749_v1 = vmul.f32 %v2060_v21, %v717_v0  ;;  %2719 = vst [vmem:[#allocation15_spill] sm:$0xff] %v2091_v23  ;;  %v1669_v25 = vpop.eup %1668  ;;  %v718_v28 = vadd.f32 -1.4531521, %v686_v9  ;;  %v702_v37 = vmul.f32 1.0614054, %v2085_v14  ;;  %vm1166_vm3 = vcmp.ge.f32.partialorder %v1991_v6, 0.0 }
 0x114   : > { %v765_v15 = vmul.f32 %v2065_v27, %v733_v62  ;;  %1684 = vrcp.f32 %v640_v13  ;;  %v1075_v32 = vmul.f32 1.442695, %v1024_v18  ;;  %v561_v46 = vand.u32 2147483647, %v2089_v19  ;;  %v1671_v56 = vpop.eup %1670 }
 0x115   : > { %v781_v24 = vadd.f32 1.4214138, %v749_v1  ;;  %1686 = vpow2.f32 %v1073_v8  ;;  %v750_v33 = vmul.f32 %v2075_v60, %v718_v28  ;;  %v734_v49 = vadd.f32 -1.4531521, %v702_v37  ;;  %v2097_v62 = vpop.eup %1672 }
 0x116   : > { %v797_v0 = vadd.f32 1.4214138, %v765_v15  ;;  %1688 = vpow2.f32 %v1043_v12  ;;  %v593_v9 = vmul.f32 0.3275911, %v561_v46  ;;  %v977_v23 = vsub.f32 0.0, %v561_v46  ;;  %v2100_v13 = vpop.eup %1674 }
 0x117   : > { %v813_v45 = vmul.f32 %v2060_v21, %v781_v24  ;;  %1690 = vpow2.f32 %v1075_v32  ;;  %v782_v15 = vadd.f32 1.4214138, %v750_v33  ;;  %v766_v18 = vmul.f32 %v2085_v14, %v734_v49  ;;  %v1677_v24 = vpop.eup %1676 }
 0x118   : > { %v829_v1 = vmul.f32 %v2065_v27, %v797_v0  ;;  %v687_v48 = vmul.f32 1.0614054, %v2097_v62  ;;  %v703_v28 = vmul.f32 1.0614054, %v2100_v13  ;;  %v625_v12 = vadd.f32 1.0, %v593_v9  ;;  %v2105_v55 = vpop.eup %1678  ;;  %v2107_v0 = vpop.permute.xlu0 %319 }
 0x119   : > { %v845_v8 = vadd.f32 -0.28449672, %v813_v45  ;;  %v1009_v37 = vmul.f32 %v977_v23, %v561_v46  ;;  %v814_v20 = vmul.f32 %v2075_v60, %v782_v15  ;;  %v798_v45 = vadd.f32 1.4214138, %v766_v18  ;;  %v2111_v17 = vpop.eup %1680 }
 0x11a   : > { %v861_v51 = vadd.f32 -0.28449672, %v829_v1  ;;  %v719_v33 = vadd.f32 -1.4531521, %v687_v48  ;;  %v735_v16 = vadd.f32 -1.4531521, %v703_v28  ;;  %1692 = vrcp.f32 %v625_v12  ;;  %v2120_v11 = vpop.eup %1682 }
 0x11b   : > { %v877_v32 = vmul.f32 %v2060_v21, %v845_v8  ;;  %v2116_v1 = vadd.f32 %v2002_v26, %v2107_v0  ;;  %v846_v46 = vadd.f32 -0.28449672, %v814_v20  ;;  %v830_v9 = vmul.f32 %v2085_v14, %v798_v45 }
 0x11c   : > { %v893_v49 = vmul.f32 %v2065_v27, %v861_v51  ;;  %v751_v8 = vmul.f32 %v2097_v62, %v719_v33  ;;  %v767_v15 = vmul.f32 %v2100_v13, %v735_v16  ;;  %v688_v51 = vmul.f32 1.0614054, %v2111_v17 }
 0x11d   : > { %v909_v23 = vadd.f32 0.2548296, %v877_v32  ;;  %v2125_v18 = vmul.f32 1.442695, %v1009_v37  ;;  %v878_v20 = vmul.f32 %v2075_v60, %v846_v46  ;;  %v862_v12 = vadd.f32 -0.28449672, %v830_v9 }
 0x11e   : > { %v925_v48 = vadd.f32 0.2548296, %v893_v49  ;;  %v2127_v28 = vpop.eup %1684  ;;  %v783_v32 = vadd.f32 1.4214138, %v751_v8  ;;  %v799_v49 = vadd.f32 1.4214138, %v767_v15 }
 0x11f   : > { %v941_v26 = vmul.f32 %v2060_v21, %v909_v23  ;;  %v1687_v45 = vpop.eup %1686  ;;  %v720_v54 = vadd.f32 -1.4531521, %v688_v51  ;;  %v704_v16 = vmul.f32 1.0614054, %v2127_v28  ;;  %v910_v2 = vadd.f32 0.2548296, %v878_v20 }
 0x120   : > { %v957_v33 = vmul.f32 %v2065_v27, %v925_v48  ;;  %v2134_v10 = vpop.eup %1688  ;;  %v894_v59 = vmul.f32 %v2085_v14, %v862_v12  ;;  %v815_v21 = vmul.f32 %v2097_v62, %v783_v32  ;;  %v2138_v23 = vpop.f32.mrb[13].mxu1  ;;  %v831_v27 = vmul.f32 %v2100_v13, %v799_v49 }
 0x121   : > { %v1101_v37 = vmul.f32 %v1669_v25, %v941_v26  ;;  %2720 = vst [vmem:[#allocation16_spill] sm:$0xff] %v2138_v23  ;;  %v2140_v46 = vpop.eup %1690  ;;  %v752_v8 = vmul.f32 %v2111_v17, %v720_v54  ;;  %v736_v48 = vadd.f32 -1.4531521, %v704_v16  ;;  %v942_v25 = vmul.f32 %v2075_v60, %v910_v2 }
 0x122   : > { %v1117_v9 = vmul.f32 %v1671_v56, %v957_v33  ;;  %v926_v51 = vadd.f32 0.2548296, %v894_v59  ;;  %v847_v26 = vadd.f32 -0.28449672, %v815_v21  ;;  %vm1182_vm4 = vcmp.ge.f32.partialorder %v1994_v7, 0.0 }
 0x123   : > { %v1133_v15 = vsub.f32 1.0, %v1101_v37  ;;  %v863_v12 = vadd.f32 -0.28449672, %v831_v27  ;;  %v784_v32 = vadd.f32 1.4214138, %v752_v8  ;;  %v768_v23 = vmul.f32 %v2127_v28, %v736_v48 }
 0x124   : > { %v1149_v20 = vsub.f32 1.0, %v1117_v9  ;;  %v1102_v33 = vmul.f32 %v1677_v24, %v942_v25  ;;  %v958_v58 = vmul.f32 %v2085_v14, %v926_v51  ;;  %v879_v49 = vmul.f32 %v2097_v62, %v847_v26  ;;  %v2150_v54 = vpop.eup %1692  ;;  %v2160_v25 = vpop.f32.mrb[14].mxu0 }
 0x125   : > { %v1197_v56 = vsub.f32 0.0, %v1133_v15  ;;  %v895_v2 = vmul.f32 %v2100_v13, %v863_v12  ;;  %v816_v59 = vmul.f32 %v2111_v17, %v784_v32  ;;  %v800_v60 = vadd.f32 1.4214138, %v768_v23 }
 0x126   : > { %v1213_v16 = vsub.f32 0.0, %v1149_v20  ;;  %v1134_v21 = vsub.f32 1.0, %v1102_v33  ;;  %v1118_v9 = vmul.f32 %v2105_v55, %v958_v58  ;;  %v911_v27 = vadd.f32 0.2548296, %v879_v49 }
 0x127   : > { %v1229_v37 = vsel %vm1165_vm1, %v1133_v15, %v1197_v56  ;;  %vm1167_vm5 = vcmp.ge.f32.partialorder %v2017_v38, 0.0  ;;  %v927_v8 = vadd.f32 0.2548296, %v895_v2  ;;  %v848_v48 = vadd.f32 -0.28449672, %v816_v59 }
 0x128   : > { %v1293_v24 = vadd.f32 1.0, %v1229_v37  ;;  %v1245_v14 = vsel %vm1181_vm2, %v1149_v20, %v1213_v16  ;;  %v1198_v26 = vsub.f32 0.0, %v1134_v21  ;;  %v1150_v23 = vsub.f32 1.0, %v1118_v9 }
 0x129   : > { %v1309_v51 = vadd.f32 1.0, %v1245_v14  ;;  %v943_v4 = vmul.f32 %v2097_v62, %v911_v27  ;;  %v959_v55 = vmul.f32 %v2100_v13, %v927_v8  ;;  %v880_v58 = vmul.f32 %v2111_v17, %v848_v48 }
 0x12a   : > { %v1325_v15 = vmul.f32 %v1293_v24, %v2025_v43  ;;  %v832_v5 = vmul.f32 %v2127_v28, %v800_v60  ;;  %v1230_v12 = vsel %vm1166_vm3, %v1134_v21, %v1198_v26  ;;  %v1214_v32 = vsub.f32 0.0, %v1150_v23 }
 0x12b   : > { %v1341_v20 = vmul.f32 %v1309_v51, %v2045_v3  ;;  %v1103_v56 = vmul.f32 %v2120_v11, %v943_v4  ;;  %v1294_v33 = vadd.f32 1.0, %v1230_v12  ;;  %v1119_v49 = vmul.f32 %v1687_v45, %v959_v55  ;;  %v2179_v11 = vpop.f32.mrb[14].mxu1 }
 0x12c   : > { %v912_v62 = vadd.f32 0.2548296, %v880_v58  ;;  %v864_v16 = vadd.f32 -0.28449672, %v832_v5  ;;  %v1246_v43 = vsel %vm1182_vm4, %v1150_v23, %v1214_v32  ;;  %v689_v2 = vmul.f32 1.0614054, %v2150_v54 }
 0x12d   : > { %v1135_v13 = vsub.f32 1.0, %v1103_v56  ;;  %v2175_v59 = vmul.f32 0.70710677, %v2116_v1  ;;  %v1326_v6 = vmul.f32 %v1294_v33, %v2063_v22  ;;  %v1310_v3 = vadd.f32 1.0, %v1246_v43 }
 0x12e   : > { %v1151_v60 = vsub.f32 1.0, %v1119_v49  ;;  %v944_v37 = vmul.f32 %v2111_v17, %v912_v62  ;;  %v896_v45 = vmul.f32 %v2127_v28, %v864_v16  ;;  %v721_v21 = vadd.f32 -1.4531521, %v689_v2  ;;  %v2221_v62 = vpop.f32.mrb[15].mxu1 }
 0x12f   : > { %v1199_v7 = vsub.f32 0.0, %v1135_v13  ;;  %v2190_v9 = vand.u32 2147483647, %v2175_v59  ;;  %v1601_v22 = vpack.c.bf16 %v1326_v6, %v1325_v15  ;;  %v1342_v27 = vmul.f32 %v1310_v3, %v2071_v42 }
 0x130   : > { %v1215_v17 = vsub.f32 0.0, %v1151_v60  ;;  %v1104_v24 = vmul.f32 %v2134_v10, %v944_v37  ;;  %v928_v8 = vadd.f32 0.2548296, %v896_v45  ;;  %v753_v48 = vmul.f32 %v2150_v54, %v721_v21 }
 0x131   : > { %v1231_v14 = vsel %vm1167_vm5, %v1135_v13, %v1199_v7  ;;  %v609_v51 = vmul.f32 0.3275911, %v2190_v9  ;;  %1453 = vst [vmem:[%s2186_s26] sm:$0xff] %v1601_v22  ;;  %v1609_v26 = vpack.c.bf16 %v1342_v27, %v1341_v20  ;;  %v1263_v23 = vmul.f32 0.5, %v2004_v29 }
 0x132   : > { %v1136_v4 = vsub.f32 1.0, %v1104_v24  ;;  %v2202_v42 = vadd.f32 %v2006_v30, %v1967_v50  ;;  %v1295_v15 = vadd.f32 1.0, %v1231_v14  ;;  %v960_v10 = vmul.f32 %v2127_v28, %v928_v8  ;;  %v2211_v50 = vpop.f32.mrb[15].mxu0 }
 0x133   : > { %v785_v55 = vadd.f32 1.4214138, %v753_v48  ;;  %v641_v38 = vadd.f32 1.0, %v609_v51  ;;  %1461 = vst [vmem:[%s2186_s26 + $0x40] sm:$0xff] %v1609_v26  ;;  %vm1183_vm6 = vcmp.ge.f32.partialorder %v2028_v44, 0.0  ;;  %vm1168_vm7 = vcmp.ge.f32.partialorder %v2032_v47, 0.0 }
 0x134   : > { %v1200_v58 = vsub.f32 0.0, %v1136_v4  ;;  %1694 = vpow2.f32 %v2125_v18  ;;  %v1247_v5 = vsel %vm1183_vm6, %v1151_v60, %v1215_v17  ;;  %v1120_v29 = vmul.f32 %v2140_v46, %v960_v10 }
 0x135   : > { %v817_v20 = vmul.f32 %v2150_v54, %v785_v55  ;;  %1696 = vrcp.f32 %v641_v38  ;;  %v1264_v28 = vmul.f32 0.5, %v2019_v39  ;;  %v2215_v12 = vmul.f32 0.70710677, %v2202_v42 }
 0x136   : > { %v1232_v30 = vsel %vm1168_vm7, %v1136_v4, %v1200_v58  ;;  %v1327_v44 = vmul.f32 %v1295_v15, %v1263_v23  ;;  %v1152_v47 = vsub.f32 1.0, %v1120_v29  ;;  %v1279_v18 = vmul.f32 0.5, %v2010_v34 }
 0x137   : > { %v1296_v32 = vadd.f32 1.0, %v1232_v30  ;;  %v849_v56 = vadd.f32 -0.28449672, %v817_v20  ;;  %v1311_v33 = vadd.f32 1.0, %v1247_v5  ;;  %v562_v46 = vand.u32 2147483647, %v2215_v12 }
 0x138   : > { %v499_v49 = vadd.f32 %v2008_v31, %v2107_v0  ;;  %v1216_v39 = vsub.f32 0.0, %v1152_v47  ;;  %v461_v13 = vadd.f32 %v2012_v35, %v1969_v52  ;;  %vm1184_vm8 = vcmp.ge.f32.partialorder %v2056_v61, 0.0 }
 0x139   : > { %v1328_v16 = vmul.f32 %v1296_v32, %v1264_v28  ;;  %v881_v43 = vmul.f32 %v2150_v54, %v849_v56  ;;  %v1280_v34 = vmul.f32 0.5, %v2035_v57  ;;  %v594_v2 = vmul.f32 0.3275911, %v562_v46 }
 0x13a   : > { %v2228_v6 = vmul.f32 0.70710677, %v499_v49  ;;  %v1248_v60 = vsel %vm1184_vm8, %v1152_v47, %v1216_v39  ;;  %v993_v0 = vsub.f32 0.0, %v2190_v9  ;;  %v1343_v37 = vmul.f32 %v1311_v33, %v1279_v18 }
 0x13b   : > { %v1602_v3 = vpack.c.bf16 %v1328_v16, %v1327_v44  ;;  %v913_v31 = vadd.f32 0.2548296, %v881_v43  ;;  %v1312_v7 = vadd.f32 1.0, %v1248_v60  ;;  %v626_v45 = vadd.f32 1.0, %v594_v2 }
 0x13c   : > { %v578_v21 = vand.u32 2147483647, %v2228_v6  ;;  %v978_v22 = vsub.f32 0.0, %v562_v46  ;;  %v2234_v61 = vmul.f32 0.70710677, %v461_v13  ;;  %v1025_v8 = vmul.f32 %v993_v0, %v2190_v9 }
 0x13d   : > { %1454 = vst [vmem:[%s2186_s26 + $0x8] sm:$0xff] %v1602_v3  ;;  %v945_v35 = vmul.f32 %v2150_v54, %v913_v31  ;;  %v1344_v27 = vmul.f32 %v1312_v7, %v1280_v34  ;;  %1698 = vrcp.f32 %v626_v45  ;;  %v325_v54 = vpop.permute.xlu1 %324  ;;  %v463_v9 = vadd.f32 %v2021_v40, %v1969_v52 }
 0x13e   : > { %v1695_v57 = vpop.eup %1694  ;;  %v610_v17 = vmul.f32 0.3275911, %v578_v21  ;;  %v563_v48 = vand.u32 2147483647, %v2234_v61  ;;  %v1010_v15 = vmul.f32 %v978_v22, %v562_v46  ;;  %v994_v10 = vsub.f32 0.0, %v578_v21 }
 0x13f   : > { %v2236_v24 = vpop.eup %1696  ;;  %v1105_v14 = vmul.f32 %v1695_v57, %v945_v35  ;;  %v1610_v51 = vpack.c.bf16 %v1344_v27, %v1343_v37  ;;  %v2243_v58 = vadd.f32 %v2014_v36, %v325_v54  ;;  %v2248_v5 = vmul.f32 0.5, %v2079_v63 }
 0x140   : > { %v705_v26 = vmul.f32 1.0614054, %v2236_v24  ;;  %v642_v23 = vadd.f32 1.0, %v610_v17  ;;  %v595_v55 = vmul.f32 0.3275911, %v563_v48  ;;  %v979_v28 = vsub.f32 0.0, %v563_v48 }
 0x141   : > { %v1137_v4 = vsub.f32 1.0, %v1105_v14  ;;  %1462 = vst [vmem:[%s2186_s26 + $0x48] sm:$0xff] %v1610_v51  ;;  %v1077_v29 = vmul.f32 1.442695, %v1025_v8  ;;  %v2252_v44 = vmul.f32 0.70710677, %v2243_v58  ;;  %v1026_v52 = vmul.f32 %v994_v10, %v578_v21 }
 0x142   : > { %v737_v38 = vadd.f32 -1.4531521, %v705_v26  ;;  %1700 = vrcp.f32 %v642_v23  ;;  %v627_v20 = vadd.f32 1.0, %v595_v55  ;;  %v2254_v32 = vmul.f32 0.70710677, %v463_v9 }
 0x143   : > { %vm1169_vm9 = vcmp.ge.f32.partialorder %v2089_v19, 0.0  ;;  %v2258_v36 = vmul.f32 0.5, %v2116_v1  ;;  %v1047_v47 = vmul.f32 1.442695, %v1010_v15  ;;  %v1201_v40 = vsub.f32 0.0, %v1137_v4 }
 0x144   : > { %v769_v30 = vmul.f32 %v2236_v24, %v737_v38  ;;  %1702 = vrcp.f32 %v627_v20  ;;  %v579_v56 = vand.u32 2147483647, %v2252_v44  ;;  %v2262_v18 = vmul.f32 0.5, %v2202_v42 }
 0x145   : > { %1704 = vpow2.f32 %v1077_v29  ;;  %v2264_v33 = vmul.f32 0.5, %v499_v49  ;;  %v564_v46 = vand.u32 2147483647, %v2254_v32  ;;  %v1011_v39 = vmul.f32 %v979_v28, %v563_v48 }
 0x146   : > { %v801_v63 = vadd.f32 1.4214138, %v769_v30  ;;  %v2270_v43 = vmul.f32 0.5, %v461_v13  ;;  %v611_v34 = vmul.f32 0.3275911, %v579_v56  ;;  %1706 = vpow2.f32 %v1047_v47  ;;  %v2721_v13 = vld [vmem:[#allocation5_spill] sm:$0xff] }
 0x147   : > { %v2267_v16 = vpop.eup %1698  ;;  %v596_v3 = vmul.f32 0.3275911, %v564_v46  ;;  %v2274_v60 = vadd.f32 %v2023_v41, %v325_v54  ;;  %v1233_v42 = vsel %vm1169_vm9, %v1137_v4, %v1201_v40  ;;  %v1079_v31 = vmul.f32 1.442695, %v1026_v52 }
 0x148   : > { %v833_v1 = vmul.f32 %v2236_v24, %v801_v63  ;;  %v690_v2 = vmul.f32 1.0614054, %v2267_v16  ;;  %v643_v0 = vadd.f32 1.0, %v611_v34  ;;  %v2283_v21 = vadd.f32 %v2721_v13, %v1971_v53 }
 0x149   : > { %v628_v7 = vadd.f32 1.0, %v596_v3  ;;  %v2279_v45 = vmul.f32 0.70710677, %v2274_v60  ;;  %v1049_v22 = vmul.f32 1.442695, %v1011_v39  ;;  %v995_v19 = vsub.f32 0.0, %v579_v56 }
 0x14a   : > { %v865_v49 = vadd.f32 -0.28449672, %v833_v1  ;;  %v722_v37 = vadd.f32 -1.4531521, %v690_v2  ;;  %1708 = vrcp.f32 %v643_v0  ;;  %v2290_v17 = vmul.f32 0.5, %v463_v9 }
 0x14b   : > { %1710 = vrcp.f32 %v628_v7  ;;  %v1297_v14 = vadd.f32 1.0, %v1233_v42  ;;  %v980_v48 = vsub.f32 0.0, %v564_v46  ;;  %v580_v51 = vand.u32 2147483647, %v2279_v45  ;;  %v2722_v42 = vld [vmem:[#allocation6_spill] sm:$0xff] }
 0x14c   : > { %v2285_v35 = vpop.eup %1700  ;;  %v897_v41 = vmul.f32 %v2236_v24, %v865_v49  ;;  %v754_v57 = vmul.f32 %v2267_v16, %v722_v37  ;;  %1712 = vpow2.f32 %v1079_v31  ;;  %v2294_v54 = vmul.f32 0.70710677, %v2283_v21 }
 0x14d   : > { %v706_v27 = vmul.f32 1.0614054, %v2285_v35  ;;  %v1027_v10 = vmul.f32 %v995_v19, %v579_v56  ;;  %v612_v55 = vmul.f32 0.3275911, %v580_v51  ;;  %v996_v38 = vsub.f32 0.0, %v580_v51 }
 0x14e   : > { %v929_v8 = vadd.f32 0.2548296, %v897_v41  ;;  %v786_v26 = vadd.f32 1.4214138, %v754_v57  ;;  %v2296_v4 = vpop.eup %1702  ;;  %vm1185_vm10 = vcmp.ge.f32.partialorder %v2175_v59, 0.0  ;;  %v1012_v52 = vmul.f32 %v980_v48, %v564_v46 }
 0x14f   : > { %v738_v23 = vadd.f32 -1.4531521, %v706_v27  ;;  %v1705_v9 = vpop.eup %1704  ;;  %v691_v30 = vmul.f32 1.0614054, %v2296_v4  ;;  %v565_v28 = vand.u32 2147483647, %v2294_v54  ;;  %v1028_v63 = vmul.f32 %v996_v38, %v580_v51 }
 0x150   : > { %v961_v15 = vmul.f32 %v2236_v24, %v929_v8  ;;  %v818_v29 = vmul.f32 %v2267_v16, %v786_v26  ;;  %v644_v40 = vadd.f32 1.0, %v612_v55  ;;  %v1707_v1 = vpop.eup %1706  ;;  %v2304_v24 = vpop.permute.xlu0 %329  ;;  %1714 = vpow2.f32 %v1049_v22 }
 0x151   : > { %v770_v20 = vmul.f32 %v2285_v35, %v738_v23  ;;  %v723_v34 = vadd.f32 -1.4531521, %v691_v30  ;;  %v597_v3 = vmul.f32 0.3275911, %v565_v28  ;;  %v2308_v49 = vadd.f32 %v2722_v42, %v2304_v24 }
 0x152   : > { %v1121_v47 = vmul.f32 %v1705_v9, %v961_v15  ;;  %v850_v56 = vadd.f32 -0.28449672, %v818_v29  ;;  %1716 = vrcp.f32 %v644_v40  ;;  %v1081_v37 = vmul.f32 1.442695, %v1027_v10 }
 0x153   : > { %v802_v39 = vadd.f32 1.4214138, %v770_v20  ;;  %v755_v0 = vmul.f32 %v2296_v4, %v723_v34  ;;  %v1051_v41 = vmul.f32 1.442695, %v1012_v52  ;;  %v1083_v19 = vmul.f32 1.442695, %v1028_v63 }
 0x154   : > { %v1153_v2 = vsub.f32 1.0, %v1121_v47  ;;  %v882_v31 = vmul.f32 %v2267_v16, %v850_v56  ;;  %v2313_v7 = vpop.eup %1708  ;;  %v629_v22 = vadd.f32 1.0, %v597_v3  ;;  %v2318_v27 = vmul.f32 %v1297_v14, %v2248_v5 }
 0x155   : > { %v834_v46 = vmul.f32 %v2285_v35, %v802_v39  ;;  %v2315_v57 = vpop.eup %1710  ;;  %v787_v51 = vadd.f32 1.4214138, %v755_v0  ;;  %vm1170_vm11 = vcmp.ge.f32.partialorder %v2215_v12, 0.0  ;;  %v707_v26 = vmul.f32 1.0614054, %v2313_v7 }
 0x156   : > { %v1217_v13 = vsub.f32 0.0, %v1153_v2  ;;  %v914_v8 = vadd.f32 0.2548296, %v882_v31  ;;  %v692_v23 = vmul.f32 1.0614054, %v2315_v57  ;;  %1718 = vrcp.f32 %v629_v22  ;;  %v1713_v10 = vpop.eup %1712 }
 0x157   : > { %v866_v48 = vadd.f32 -0.28449672, %v834_v46  ;;  %v2324_v15 = vmul.f32 0.70710677, %v2308_v49  ;;  %v819_v5 = vmul.f32 %v2296_v4, %v787_v51  ;;  %1720 = vpow2.f32 %v1081_v37 }
 0x158   : > { %v946_v55 = vmul.f32 %v2267_v16, %v914_v8  ;;  %v1249_v14 = vsel %vm1185_vm10, %v1153_v2, %v1217_v13  ;;  %v739_v9 = vadd.f32 -1.4531521, %v707_v26  ;;  %v724_v29 = vadd.f32 -1.4531521, %v692_v23  ;;  %v2723_v8 = vld [vmem:[#allocation7_spill] sm:$0xff] }
 0x159   : > { %v898_v38 = vmul.f32 %v2285_v35, %v866_v48  ;;  %v981_v20 = vsub.f32 0.0, %v565_v28  ;;  %v851_v52 = vadd.f32 -0.28449672, %v819_v5  ;;  %1722 = vpow2.f32 %v1051_v41 }
 0x15a   : > { %v1106_v30 = vmul.f32 %v1707_v1, %v946_v55  ;;  %vm1186_vm12 = vcmp.ge.f32.partialorder %v2228_v6, 0.0  ;;  %v771_v40 = vmul.f32 %v2313_v7, %v739_v9  ;;  %v756_v16 = vmul.f32 %v2315_v57, %v724_v29  ;;  %v1715_v56 = vpop.eup %1714 }
 0x15b   : > { %v930_v47 = vadd.f32 0.2548296, %v898_v38  ;;  %1724 = vpow2.f32 %v1083_v19  ;;  %v2335_v63 = vand.u32 2147483647, %v2324_v15  ;;  %v1313_v59 = vadd.f32 1.0, %v1249_v14 }
 0x15c   : > { %v1138_v39 = vsub.f32 1.0, %v1106_v30  ;;  %v883_v1 = vmul.f32 %v2296_v4, %v851_v52  ;;  %v2339_v2 = vpop.eup %1716  ;;  %v803_v3 = vadd.f32 1.4214138, %v771_v40  ;;  %v788_v42 = vadd.f32 1.4214138, %v756_v16 }
 0x15d   : > { %v962_v34 = vmul.f32 %v2285_v35, %v930_v47  ;;  %v1013_v31 = vmul.f32 %v981_v20, %v565_v28  ;;  %v613_v46 = vmul.f32 0.3275911, %v2335_v63  ;;  %v708_v41 = vmul.f32 1.0614054, %v2339_v2 }
 0x15e   : > { %v1202_v0 = vsub.f32 0.0, %v1138_v39  ;;  %v915_v13 = vadd.f32 0.2548296, %v883_v1  ;;  %vm1171_vm13 = vcmp.ge.f32.partialorder %v2234_v61, 0.0  ;;  %v835_v19 = vmul.f32 %v2313_v7, %v803_v3 }
 0x15f   : > { %v1122_v37 = vmul.f32 %v1713_v10, %v962_v34  ;;  %v820_v35 = vmul.f32 %v2315_v57, %v788_v42  ;;  %v645_v22 = vadd.f32 1.0, %v613_v46  ;;  %v2348_v48 = vadd.f32 %v2723_v8, %v1971_v53 }
 0x160   : > { %v1234_v28 = vsel %vm1170_vm11, %v1138_v39, %v1202_v0  ;;  %v947_v26 = vmul.f32 %v2296_v4, %v915_v13  ;;  %v740_v23 = vadd.f32 -1.4531521, %v708_v41  ;;  %v2353_v10 = vpop.eup %1718  ;;  %v867_v38 = vadd.f32 -0.28449672, %v835_v19  ;;  %v2724_v13 = vld [vmem:[#allocation8_spill] sm:$0xff] }
 0x161   : > { %v1154_v51 = vsub.f32 1.0, %v1122_v37  ;;  %v1298_v55 = vadd.f32 1.0, %v1234_v28  ;;  %v852_v5 = vadd.f32 -0.28449672, %v820_v35  ;;  %1726 = vrcp.f32 %v645_v22  ;;  %v1721_v14 = vpop.eup %1720 }
 0x162   : > { %v1107_v29 = vmul.f32 %v1715_v56, %v947_v26  ;;  %v772_v20 = vmul.f32 %v2339_v2, %v740_v23  ;;  %v693_v53 = vmul.f32 1.0614054, %v2353_v10  ;;  %v1345_v12 = vmul.f32 %v1313_v59, %v2258_v36 }
 0x163   : > { %v1218_v9 = vsub.f32 0.0, %v1154_v51  ;;  %v1330_v30 = vmul.f32 %v1298_v55, %v2262_v18  ;;  %v899_v4 = vmul.f32 %v2313_v7, %v867_v38  ;;  %v884_v47 = vmul.f32 %v2315_v57, %v852_v5  ;;  %v1723_v52 = vpop.eup %1722 }
 0x164   : > { %v1139_v16 = vsub.f32 1.0, %v1107_v29  ;;  %v804_v39 = vadd.f32 1.4214138, %v772_v20  ;;  %v725_v56 = vadd.f32 -1.4531521, %v693_v53  ;;  %v997_v0 = vsub.f32 0.0, %v2335_v63 }
 0x165   : > { %v1250_v40 = vsel %vm1186_vm12, %v1154_v51, %v1218_v9  ;;  %v1725_v34 = vpop.eup %1724  ;;  %v1603_v1 = vpack.c.bf16 %v1330_v30, %v2318_v27  ;;  %v931_v42 = vadd.f32 0.2548296, %v899_v4  ;;  %v916_v36 = vadd.f32 0.2548296, %v884_v47 }
 0x166   : > { %v1314_v3 = vadd.f32 1.0, %v1250_v40  ;;  %v1203_v59 = vsub.f32 0.0, %v1139_v16  ;;  %v836_v18 = vmul.f32 %v2339_v2, %v804_v39  ;;  %v757_v46 = vmul.f32 %v2353_v10, %v725_v56 }
 0x167   : > { %1455 = vst [vmem:[%s2186_s26 + $0x10] sm:$0xff] %v1603_v1  ;;  %v963_v37 = vmul.f32 %v2313_v7, %v931_v42  ;;  %vm1187_vm14 = vcmp.ge.f32.partialorder %v2252_v44, 0.0  ;;  %v948_v27 = vmul.f32 %v2315_v57, %v916_v36  ;;  %v2374_v41 = vadd.f32 %v2724_v13, %v2304_v24 }
 0x168   : > { %v1346_v6 = vmul.f32 %v1314_v3, %v2264_v33  ;;  %v1235_v19 = vsel %vm1171_vm13, %v1139_v16, %v1203_v59  ;;  %vm1172_vm15 = vcmp.ge.f32.partialorder %v2254_v32, 0.0  ;;  %v868_v35 = vadd.f32 -0.28449672, %v836_v18  ;;  %v2725_v18 = vld [vmem:[#allocation2_spill] sm:$0xff]  ;;  %v2726_v32 = vld [vmem:[#allocation9_spill] sm:$0xff] }
 0x169   : > { %v789_v22 = vadd.f32 1.4214138, %v757_v46  ;;  %v1123_v33 = vmul.f32 %v1721_v14, %v963_v37  ;;  %v1108_v28 = vmul.f32 %v1723_v52, %v948_v27  ;;  %v1053_v7 = vmul.f32 1.442695, %v1013_v31 }
 0x16a   : > { %v1611_v8 = vpack.c.bf16 %v1346_v6, %v1345_v12  ;;  %v900_v51 = vmul.f32 %v2339_v2, %v868_v35  ;;  %v1029_v57 = vmul.f32 %v997_v0, %v2335_v63  ;;  %v2383_v24 = vmul.f32 0.70710677, %v2348_v48 }
 0x16b   : > { %v821_v26 = vmul.f32 %v2353_v10, %v789_v22  ;;  %v2385_v23 = vpop.eup %1726  ;;  %v1299_v61 = vadd.f32 1.0, %v1235_v19  ;;  %v1155_v55 = vsub.f32 1.0, %v1123_v33  ;;  %v1140_v38 = vsub.f32 1.0, %v1108_v28  ;;  %v335_v33 = vpop.permute.xlu1 %334 }
 0x16c   : > { %1463 = vst [vmem:[%s2186_s26 + $0x50] sm:$0xff] %v1611_v8  ;;  %v2389_v5 = vmul.f32 0.70710677, %v2374_v41  ;;  %v932_v14 = vadd.f32 0.2548296, %v900_v51  ;;  %1728 = vpow2.f32 %v1053_v7  ;;  %v2408_v46 = vadd.f32 %v2726_v32, %v2725_v18 }
 0x16d   : > { %v853_v31 = vadd.f32 -0.28449672, %v821_v26  ;;  %v709_v9 = vmul.f32 1.0614054, %v2385_v23  ;;  %v1219_v29 = vsub.f32 0.0, %v1155_v55  ;;  %v1204_v20 = vsub.f32 0.0, %v1140_v38 }
 0x16e   : > { %v566_v63 = vand.u32 2147483647, %v2383_v24  ;;  %v964_v53 = vmul.f32 %v2339_v2, %v932_v14  ;;  %v2396_v4 = vand.u32 2147483647, %v2389_v5  ;;  %v1331_v47 = vmul.f32 %v1299_v61, %v2270_v43 }
 0x16f   : > { %v885_v12 = vmul.f32 %v2353_v10, %v853_v31  ;;  %v741_v30 = vadd.f32 -1.4531521, %v709_v9  ;;  %v1236_v52 = vsel %vm1172_vm15, %v1140_v38, %v1204_v20  ;;  %v1085_v40 = vmul.f32 1.442695, %v1029_v57  ;;  %v2728_v57 = vld [vmem:[#allocation11_spill] sm:$0xff] }
 0x170   : > { %v598_v16 = vmul.f32 0.3275911, %v566_v63  ;;  %v1251_v39 = vsel %vm1187_vm14, %v1155_v55, %v1219_v29  ;;  %v1300_v56 = vadd.f32 1.0, %v1236_v52  ;;  %v1124_v1 = vmul.f32 %v1725_v34, %v964_v53 }
 0x171   : > { %v917_v3 = vadd.f32 0.2548296, %v885_v12  ;;  %v773_v2 = vmul.f32 %v2385_v23, %v741_v30  ;;  %v614_v36 = vmul.f32 0.3275911, %v2396_v4  ;;  %v1315_v0 = vadd.f32 1.0, %v1251_v39 }
 0x172   : > { %v630_v42 = vadd.f32 1.0, %v598_v16  ;;  %v1332_v59 = vmul.f32 %v1300_v56, %v2290_v17  ;;  %v1156_v43 = vsub.f32 1.0, %v1124_v1  ;;  %v1283_v13 = vmul.f32 0.5, %v2243_v58  ;;  %v2727_v58 = vld [vmem:[#allocation10_spill] sm:$0xff] }
 0x173   : > { %v805_v6 = vadd.f32 1.4214138, %v773_v2  ;;  %v646_v44 = vadd.f32 1.0, %v614_v36  ;;  %v949_v27 = vmul.f32 %v2353_v10, %v917_v3  ;;  %vm1188_vm0 = vcmp.ge.f32.partialorder %v2279_v45, 0.0 }
 0x174   : > { %1730 = vrcp.f32 %v630_v42  ;;  %v1604_v37 = vpack.c.bf16 %v1332_v59, %v1331_v47  ;;  %v1220_v34 = vsub.f32 0.0, %v1156_v43  ;;  %v1284_v35 = vmul.f32 0.5, %v2274_v60 }
 0x175   : > { %1732 = vpow2.f32 %v1085_v40  ;;  %v837_v17 = vmul.f32 %v2385_v23, %v805_v6  ;;  %v982_v22 = vsub.f32 0.0, %v566_v63  ;;  %v1347_v28 = vmul.f32 %v1315_v0, %v1283_v13 }
 0x176   : > { %1456 = vst [vmem:[%s2186_s26 + $0x18] sm:$0xff] %v1604_v37  ;;  %v1252_v19 = vsel %vm1188_vm0, %v1156_v43, %v1220_v34  ;;  %1734 = vrcp.f32 %v646_v44  ;;  %v1729_v8 = vpop.eup %1728  ;;  %v2417_v10 = vmul.f32 0.70710677, %v2408_v46  ;;  %v2420_v45 = vadd.f32 %v2727_v58, %v335_v33  ;;  %v2729_v34 = vld [vmem:[#allocation12_spill] sm:$0xff] }
 0x177   : > { %v1316_v7 = vadd.f32 1.0, %v1252_v19  ;;  %v869_v51 = vadd.f32 -0.28449672, %v837_v17  ;;  %v1109_v26 = vmul.f32 %v1729_v8, %v949_v27  ;;  %v2424_v61 = vadd.f32 %v2728_v57, %v2725_v18 }
 0x178   : > { %v567_v38 = vand.u32 2147483647, %v2417_v10  ;;  %v1014_v14 = vmul.f32 %v982_v22, %v566_v63  ;;  %v2429_v31 = vmul.f32 0.70710677, %v2420_v45  ;;  %v998_v12 = vsub.f32 0.0, %v2396_v4 }
 0x179   : > { %v1348_v60 = vmul.f32 %v1316_v7, %v1284_v35  ;;  %v901_v55 = vmul.f32 %v2385_v23, %v869_v51  ;;  %v1141_v53 = vsub.f32 1.0, %v1109_v26  ;;  %v2434_v47 = vmul.f32 0.70710677, %v2424_v61  ;;  %v2470_v7 = vpop.permute.xlu0 %339 }
 0x17a   : > { %v599_v20 = vmul.f32 0.3275911, %v567_v38  ;;  %v583_v30 = vand.u32 2147483647, %v2429_v31  ;;  %v2440_v40 = vmul.f32 0.5, %v2283_v21  ;;  %vm1173_vm1 = vcmp.ge.f32.partialorder %v2294_v54, 0.0 }
 0x17b   : > { %v1612_v9 = vpack.c.bf16 %v1348_v60, %v1347_v28  ;;  %v933_v29 = vadd.f32 0.2548296, %v901_v55  ;;  %v1055_v1 = vmul.f32 1.442695, %v1014_v14  ;;  %v2446_v42 = vand.u32 2147483647, %v2434_v47 }
 0x17c   : > { %v631_v16 = vadd.f32 1.0, %v599_v20  ;;  %v615_v3 = vmul.f32 0.3275911, %v583_v30  ;;  %v1205_v59 = vsub.f32 0.0, %v1141_v53  ;;  %v1030_v43 = vmul.f32 %v998_v12, %v2396_v4  ;;  %v2730_v60 = vld [vmem:[#allocation3_spill] sm:$0xff]  ;;  %v2731_v55 = vld [vmem:[#allocation13_spill] sm:$0xff] }
 0x17d   : > { %1464 = vst [vmem:[%s2186_s26 + $0x58] sm:$0xff] %v1612_v9  ;;  %v965_v63 = vmul.f32 %v2385_v23, %v933_v29  ;;  %v2452_v18 = vmul.f32 0.5, %v2308_v49  ;;  %v983_v0 = vsub.f32 0.0, %v567_v38  ;;  %v600_v6 = vmul.f32 0.3275911, %v2446_v42  ;;  %v2732_v14 = vld [vmem:[#allocation14_spill] sm:$0xff] }
 0x17e   : > { %v2436_v52 = vpop.eup %1730  ;;  %1736 = vrcp.f32 %v631_v16  ;;  %v647_v23 = vadd.f32 1.0, %v615_v3  ;;  %vm1189_vm2 = vcmp.ge.f32.partialorder %v2324_v15, 0.0  ;;  %v2459_v37 = vmul.f32 0.5, %v2348_v48 }
 0x17f   : > { %v1733_v39 = vpop.eup %1732  ;;  %v694_v56 = vmul.f32 1.0614054, %v2436_v52  ;;  %1738 = vpow2.f32 %v1055_v1  ;;  %v2462_v27 = vadd.f32 %v2729_v34, %v335_v33  ;;  %v632_v49 = vadd.f32 1.0, %v600_v6 }
 0x180   : > { %v1125_v2 = vmul.f32 %v1733_v39, %v965_v63  ;;  %v2448_v36 = vpop.eup %1734  ;;  %1740 = vrcp.f32 %v647_v23  ;;  %v1237_v17 = vsel %vm1173_vm1, %v1141_v53, %v1205_v59  ;;  %v1087_v35 = vmul.f32 1.442695, %v1030_v43 }
 0x181   : > { %v726_v21 = vadd.f32 -1.4531521, %v694_v56  ;;  %v710_v32 = vmul.f32 1.0614054, %v2448_v36  ;;  %v2467_v22 = vmul.f32 0.70710677, %v2462_v27  ;;  %v1015_v28 = vmul.f32 %v983_v0, %v567_v38 }
 0x182   : > { %v1157_v4 = vsub.f32 1.0, %v1125_v2  ;;  %v999_v48 = vsub.f32 0.0, %v583_v30  ;;  %1742 = vrcp.f32 %v632_v49  ;;  %v2474_v51 = vmul.f32 0.5, %v2374_v41 }
 0x183   : > { %v758_v44 = vmul.f32 %v2436_v52, %v726_v21  ;;  %v742_v13 = vadd.f32 -1.4531521, %v710_v32  ;;  %v2477_v54 = vmul.f32 0.5, %v2408_v46  ;;  %v2480_v26 = vand.u32 2147483647, %v2467_v22 }
 0x184   : > { %v1221_v58 = vsub.f32 0.0, %v1157_v4  ;;  %v2484_v38 = vadd.f32 %v2731_v55, %v2730_v60  ;;  %v2488_v9 = vadd.f32 %v2732_v14, %v2470_v7  ;;  %v1301_v29 = vadd.f32 1.0, %v1237_v17 }
 0x185   : > { %v790_v19 = vadd.f32 1.4214138, %v758_v44  ;;  %v774_v8 = vmul.f32 %v2448_v36, %v742_v13  ;;  %1744 = vpow2.f32 %v1087_v35  ;;  %v616_v41 = vmul.f32 0.3275911, %v2480_v26 }
 0x186   : > { %v1057_v12 = vmul.f32 1.442695, %v1015_v28  ;;  %v1031_v63 = vmul.f32 %v999_v48, %v583_v30  ;;  %v2495_v16 = vmul.f32 0.70710677, %v2484_v38  ;;  %v2500_v3 = vmul.f32 0.70710677, %v2488_v9 }
 0x187   : > { %v822_v33 = vmul.f32 %v2436_v52, %v790_v19  ;;  %v806_v57 = vadd.f32 1.4214138, %v774_v8  ;;  %v648_v1 = vadd.f32 1.0, %v616_v41  ;;  %v1253_v2 = vsel %vm1189_vm2, %v1157_v4, %v1221_v58 }
 0x188   : > { %v2491_v46 = vpop.eup %1736  ;;  %v984_v21 = vsub.f32 0.0, %v2446_v42  ;;  %v2506_v43 = vand.u32 2147483647, %v2495_v16  ;;  %v2509_v0 = vand.u32 2147483647, %v2500_v3  ;;  %vm1174_vm3 = vcmp.ge.f32.partialorder %v2383_v24, 0.0 }
 0x189   : > { %v854_v20 = vadd.f32 -0.28449672, %v822_v33  ;;  %v838_v53 = vmul.f32 %v2448_v36, %v806_v57  ;;  %v695_v56 = vmul.f32 1.0614054, %v2491_v46  ;;  %v1739_v30 = vpop.eup %1738  ;;  %1746 = vrcp.f32 %v648_v1 }
 0x18a   : > { %v2511_v6 = vpop.eup %1740  ;;  %1748 = vpow2.f32 %v1057_v12  ;;  %v1089_v44 = vmul.f32 1.442695, %v1031_v63  ;;  %v601_v34 = vmul.f32 0.3275911, %v2506_v43  ;;  %v617_v17 = vmul.f32 0.3275911, %v2509_v0 }
 0x18b   : > { %v886_v39 = vmul.f32 %v2436_v52, %v854_v20  ;;  %v870_v59 = vadd.f32 -0.28449672, %v838_v53  ;;  %v727_v32 = vadd.f32 -1.4531521, %v695_v56  ;;  %v711_v49 = vmul.f32 1.0614054, %v2511_v6 }
 0x18c   : > { %v2520_v19 = vpop.eup %1742  ;;  %v1317_v35 = vadd.f32 1.0, %v1253_v2  ;;  %v1016_v28 = vmul.f32 %v984_v21, %v2446_v42  ;;  %v633_v48 = vadd.f32 1.0, %v601_v34  ;;  %vm1190_vm4 = vcmp.ge.f32.partialorder %v2389_v5, 0.0 }
 0x18d   : > { %v918_v23 = vadd.f32 0.2548296, %v886_v39  ;;  %v902_v15 = vmul.f32 %v2448_v36, %v870_v59  ;;  %v759_v13 = vmul.f32 %v2491_v46, %v727_v32  ;;  %v743_v57 = vadd.f32 -1.4531521, %v711_v49 }
 0x18e   : > { %v1000_v14 = vsub.f32 0.0, %v2480_v26  ;;  %1750 = vrcp.f32 %v633_v48  ;;  %v649_v20 = vadd.f32 1.0, %v617_v17  ;;  %v1333_v39 = vmul.f32 %v1301_v29, %v2440_v40 }
 0x18f   : > { %v950_v4 = vmul.f32 %v2436_v52, %v918_v23  ;;  %v934_v8 = vadd.f32 0.2548296, %v902_v15  ;;  %v791_v58 = vadd.f32 1.4214138, %v759_v13  ;;  %v696_v52 = vmul.f32 1.0614054, %v2520_v19  ;;  %v1745_v41 = vpop.eup %1744 }
 0x190   : > { %v775_v42 = vmul.f32 %v2511_v6, %v743_v57  ;;  %1752 = vpow2.f32 %v1089_v44  ;;  %v1059_v1 = vmul.f32 1.442695, %v1016_v28  ;;  %v1032_v32 = vmul.f32 %v1000_v14, %v2480_v26 }
 0x191   : > { %v1110_v33 = vmul.f32 %v1739_v30, %v950_v4  ;;  %v966_v55 = vmul.f32 %v2448_v36, %v934_v8  ;;  %v823_v12 = vmul.f32 %v2491_v46, %v791_v58  ;;  %v728_v63 = vadd.f32 -1.4531521, %v696_v52  ;;  %v2733_v8 = vld [vmem:[#allocation15_spill] sm:$0xff] }
 0x192   : > { %v807_v21 = vadd.f32 1.4214138, %v775_v42  ;;  %v1349_v30 = vmul.f32 %v1317_v35, %v2452_v18  ;;  %1754 = vrcp.f32 %v649_v20  ;;  %v2543_v28 = vadd.f32 %v2733_v8, %v2730_v60 }
 0x193   : > { %v1142_v53 = vsub.f32 1.0, %v1110_v33  ;;  %v1126_v56 = vmul.f32 %v1745_v41, %v966_v55  ;;  %v855_v59 = vadd.f32 -0.28449672, %v823_v12  ;;  %v760_v36 = vmul.f32 %v2520_v19, %v728_v63  ;;  %v2533_v15 = vpop.eup %1746 }
 0x194   : > { %v839_v29 = vmul.f32 %v2511_v6, %v807_v21  ;;  %v1749_v4 = vpop.eup %1748  ;;  %1756 = vpow2.f32 %v1059_v1  ;;  %v712_v18 = vmul.f32 1.0614054, %v2533_v15  ;;  %vm1175_vm5 = vcmp.ge.f32.partialorder %v2417_v10, 0.0 }
 0x195   : > { %v1206_v2 = vsub.f32 0.0, %v1142_v53  ;;  %v1158_v23 = vsub.f32 1.0, %v1126_v56  ;;  %v887_v40 = vmul.f32 %v2491_v46, %v855_v59  ;;  %v792_v44 = vadd.f32 1.4214138, %v760_v36 }
 0x196   : > { %v871_v35 = vadd.f32 -0.28449672, %v839_v29  ;;  %v744_v33 = vadd.f32 -1.4531521, %v712_v18  ;;  %v1091_v58 = vmul.f32 1.442695, %v1032_v32 }
 0x197   : > { %v1238_v34 = vsel %vm1174_vm3, %v1142_v53, %v1206_v2  ;;  %v1222_v49 = vsub.f32 0.0, %v1158_v23  ;;  %v919_v17 = vadd.f32 0.2548296, %v887_v40  ;;  %v824_v26 = vmul.f32 %v2520_v19, %v792_v44 }
 0x198   : > { %v1302_v13 = vadd.f32 1.0, %v1238_v34  ;;  %v903_v55 = vmul.f32 %v2511_v6, %v871_v35  ;;  %v2551_v20 = vpop.eup %1750  ;;  %v776_v41 = vmul.f32 %v2533_v15, %v744_v33  ;;  %v2556_v5 = vmul.f32 0.70710677, %v2543_v28 }
 0x199   : > { %v1254_v48 = vsel %vm1190_vm4, %v1158_v23, %v1222_v49  ;;  %v951_v52 = vmul.f32 %v2491_v46, %v919_v17  ;;  %v856_v14 = vadd.f32 -0.28449672, %v824_v26  ;;  %1758 = vpow2.f32 %v1091_v58 }
 0x19a   : > { %v1334_v24 = vmul.f32 %v1302_v13, %v2459_v37  ;;  %v1318_v57 = vadd.f32 1.0, %v1254_v48  ;;  %v985_v37 = vsub.f32 0.0, %v2506_v43  ;;  %v935_v42 = vadd.f32 0.2548296, %v903_v55  ;;  %v1753_v46 = vpop.eup %1752 }
 0x19b   : > { %v1111_v12 = vmul.f32 %v1749_v4, %v951_v52  ;;  %v888_v63 = vmul.f32 %v2520_v19, %v856_v14  ;;  %v808_v56 = vadd.f32 1.4214138, %v776_v41  ;;  %v2563_v1 = vand.u32 2147483647, %v2556_v5 }
 0x19c   : > { %v1605_v60 = vpack.c.bf16 %v1334_v24, %v1333_v39  ;;  %v1350_v53 = vmul.f32 %v1318_v57, %v2474_v51  ;;  %v697_v39 = vmul.f32 1.0614054, %v2551_v20  ;;  %v967_v21 = vmul.f32 %v2511_v6, %v935_v42  ;;  %v2566_v51 = vpop.eup %1754 }
 0x19d   : > { %v1143_v59 = vsub.f32 1.0, %v1111_v12  ;;  %v920_v36 = vadd.f32 0.2548296, %v888_v63  ;;  %v840_v23 = vmul.f32 %v2533_v15, %v808_v56  ;;  %v1017_v34 = vmul.f32 %v985_v37, %v2506_v43 }
 0x19e   : > { %1457 = vst [vmem:[%s2186_s26 + $0x20] sm:$0xff] %v1605_v60  ;;  %v1613_v2 = vpack.c.bf16 %v1350_v53, %v1349_v30  ;;  %v729_v32 = vadd.f32 -1.4531521, %v697_v39  ;;  %v602_v40 = vmul.f32 0.3275911, %v2563_v1  ;;  %v1127_v44 = vmul.f32 %v1753_v46, %v967_v21  ;;  %v1757_v13 = vpop.eup %1756  ;;  %v2735_v39 = vld [vmem:[#allocation4_spill] sm:$0xff] }
 0x19f   : > { %v1207_v29 = vsub.f32 0.0, %v1143_v59  ;;  %v952_v4 = vmul.f32 %v2520_v19, %v920_v36  ;;  %v713_v30 = vmul.f32 1.0614054, %v2566_v51  ;;  %vm1191_vm6 = vcmp.ge.f32.partialorder %v2429_v31, 0.0  ;;  %v2734_v19 = vld [vmem:[#allocation16_spill] sm:$0xff] }
 0x1a0   : > { %1465 = vst [vmem:[%s2186_s26 + $0x60] sm:$0xff] %v1613_v2  ;;  %v872_v6 = vadd.f32 -0.28449672, %v840_v23  ;;  %v761_v49 = vmul.f32 %v2551_v20, %v729_v32  ;;  %v634_v18 = vadd.f32 1.0, %v602_v40  ;;  %v1159_v43 = vsub.f32 1.0, %v1127_v44 }
 0x1a1   : > { %v1239_v17 = vsel %vm1175_vm5, %v1143_v59, %v1207_v29  ;;  %v1112_v35 = vmul.f32 %v1757_v13, %v952_v4  ;;  %v745_v26 = vadd.f32 -1.4531521, %v713_v30  ;;  %v2581_v48 = vadd.f32 %v2734_v19, %v2470_v7 }
 0x1a2   : > { %v904_v8 = vmul.f32 %v2533_v15, %v872_v6  ;;  %v793_v24 = vadd.f32 1.4214138, %v761_v49  ;;  %1760 = vrcp.f32 %v634_v18  ;;  %v1223_v33 = vsub.f32 0.0, %v1159_v43  ;;  %v345_v49 = vpop.permute.xlu1 %344 }
 0x1a3   : > { %v1144_v58 = vsub.f32 1.0, %v1112_v35  ;;  %v1061_v57 = vmul.f32 1.442695, %v1017_v34  ;;  %v777_v52 = vmul.f32 %v2566_v51, %v745_v26  ;;  %v1303_v55 = vadd.f32 1.0, %v1239_v17  ;;  %v1759_v53 = vpop.eup %1758 }
 0x1a4   : > { %v1272_v10 = vmul.f32 0.5, %v2424_v61  ;;  %v936_v14 = vadd.f32 0.2548296, %v904_v8  ;;  %v825_v60 = vmul.f32 %v2551_v20, %v793_v24  ;;  %v1255_v41 = vsel %vm1191_vm6, %v1159_v43, %v1223_v33 }
 0x1a5   : > { %vm1176_vm7 = vcmp.ge.f32.partialorder %v2434_v47, 0.0  ;;  %v1208_v37 = vsub.f32 0.0, %v1144_v58  ;;  %v1001_v7 = vsub.f32 0.0, %v2509_v0  ;;  %v809_v63 = vadd.f32 1.4214138, %v777_v52 }
 0x1a6   : > { %v968_v12 = vmul.f32 %v2533_v15, %v936_v14  ;;  %v857_v42 = vadd.f32 -0.28449672, %v825_v60  ;;  %v2592_v46 = vmul.f32 0.70710677, %v2581_v48  ;;  %1762 = vpow2.f32 %v1061_v57 }
 0x1a7   : > { %v1240_v61 = vsel %vm1176_vm7, %v1144_v58, %v1208_v37  ;;  %v986_v56 = vsub.f32 0.0, %v2563_v1  ;;  %v2597_v31 = vadd.f32 %v2160_v25, %v2735_v39  ;;  %v1335_v47 = vmul.f32 %v1303_v55, %v2477_v54 }
 0x1a8   : > { %v1304_v2 = vadd.f32 1.0, %v1240_v61  ;;  %v1128_v59 = vmul.f32 %v1759_v53, %v968_v12  ;;  %v889_v21 = vmul.f32 %v2551_v20, %v857_v42  ;;  %v1287_v15 = vmul.f32 0.5, %v2420_v45 }
 0x1a9   : > { %v1319_v36 = vadd.f32 1.0, %v1255_v41  ;;  %v1033_v23 = vmul.f32 %v1001_v7, %v2509_v0  ;;  %v586_v32 = vand.u32 2147483647, %v2592_v46  ;;  %v841_v29 = vmul.f32 %v2566_v51, %v809_v63 }
 0x1aa   : > { %v1336_v34 = vmul.f32 %v1304_v2, %v1272_v10  ;;  %v1160_v40 = vsub.f32 1.0, %v1128_v59  ;;  %v2606_v25 = vmul.f32 0.70710677, %v2597_v31  ;;  %vm1192_vm8 = vcmp.ge.f32.partialorder %v2467_v22, 0.0 }
 0x1ab   : > { %v1288_v54 = vmul.f32 0.5, %v2462_v27  ;;  %v921_v44 = vadd.f32 0.2548296, %v889_v21  ;;  %v618_v4 = vmul.f32 0.3275911, %v586_v32  ;;  %v1018_v0 = vmul.f32 %v986_v56, %v2563_v1 }
 0x1ac   : > { %v1761_v45 = vpop.eup %1760  ;;  %v1606_v30 = vpack.c.bf16 %v1336_v34, %v1335_v47  ;;  %v1224_v13 = vsub.f32 0.0, %v1160_v40  ;;  %v571_v6 = vand.u32 2147483647, %v2606_v25  ;;  %v1351_v18 = vmul.f32 %v1319_v36, %v1287_v15 }
 0x1ad   : > { %v1093_v17 = vmul.f32 1.442695, %v1033_v23  ;;  %v698_v43 = vmul.f32 1.0614054, %v1761_v45  ;;  %v650_v35 = vadd.f32 1.0, %v618_v4  ;;  %v2614_v27 = vadd.f32 %v2179_v11, %v345_v49 }
 0x1ae   : > { %1458 = vst [vmem:[%s2186_s26 + $0x28] sm:$0xff] %v1606_v30  ;;  %v1256_v26 = vsel %vm1192_vm8, %v1160_v40, %v1224_v13  ;;  %v873_v8 = vadd.f32 -0.28449672, %v841_v29  ;;  %v603_v22 = vmul.f32 0.3275911, %v571_v6  ;;  %v953_v19 = vmul.f32 %v2551_v20, %v921_v44 }
 0x1af   : > { %v1320_v24 = vadd.f32 1.0, %v1256_v26  ;;  %v730_v33 = vadd.f32 -1.4531521, %v698_v43  ;;  %1764 = vrcp.f32 %v650_v35  ;;  %v1063_v1 = vmul.f32 1.442695, %v1018_v0 }
 0x1b0   : > { %v635_v58 = vadd.f32 1.0, %v603_v22  ;;  %v1763_v57 = vpop.eup %1762  ;;  %v905_v10 = vmul.f32 %v2566_v51, %v873_v8  ;;  %1766 = vpow2.f32 %v1093_v17  ;;  %v2619_v14 = vmul.f32 0.70710677, %v2614_v27 }
 0x1b1   : > { %v1352_v52 = vmul.f32 %v1320_v24, %v1288_v54  ;;  %v762_v55 = vmul.f32 %v1761_v45, %v730_v33  ;;  %v1113_v11 = vmul.f32 %v1763_v57, %v953_v19  ;;  %v1002_v20 = vsub.f32 0.0, %v586_v32 }
 0x1b2   : > { %1768 = vrcp.f32 %v635_v58  ;;  %v587_v37 = vand.u32 2147483647, %v2619_v14  ;;  %v937_v53 = vadd.f32 0.2548296, %v905_v10  ;;  %v2625_v42 = vadd.f32 %v2211_v50, %v2735_v39 }
 0x1b3   : > { %v1614_v60 = vpack.c.bf16 %v1352_v52, %v1351_v18  ;;  %v794_v41 = vadd.f32 1.4214138, %v762_v55  ;;  %1770 = vpow2.f32 %v1063_v1  ;;  %v2628_v63 = vadd.f32 %v2221_v62, %v345_v49 }
 0x1b4   : > { %v619_v12 = vmul.f32 0.3275911, %v587_v37  ;;  %v1145_v61 = vsub.f32 1.0, %v1113_v11  ;;  %v1034_v47 = vmul.f32 %v1002_v20, %v586_v32  ;;  %v2631_v59 = vmul.f32 0.70710677, %v2625_v42 }
 0x1b5   : > { %1466 = vst [vmem:[%s2186_s26 + $0x68] sm:$0xff] %v1614_v60  ;;  %v826_v7 = vmul.f32 %v1761_v45, %v794_v41  ;;  %v987_v36 = vsub.f32 0.0, %v571_v6  ;;  %v2636_v23 = vmul.f32 0.70710677, %v2628_v63  ;;  %v969_v50 = vmul.f32 %v2566_v51, %v937_v53 }
 0x1b6   : > { %v651_v2 = vadd.f32 1.0, %v619_v12  ;;  %v1209_v62 = vsub.f32 0.0, %v1145_v61  ;;  %v2641_v32 = vand.u32 2147483647, %v2631_v59  ;;  %v1095_v54 = vmul.f32 1.442695, %v1034_v47 }
 0x1b7   : > { %v858_v56 = vadd.f32 -0.28449672, %v826_v7  ;;  %v2644_v44 = vand.u32 2147483647, %v2636_v23  ;;  %vm1177_vm9 = vcmp.ge.f32.partialorder %v2495_v16, 0.0  ;;  %v1019_v51 = vmul.f32 %v987_v36, %v571_v6 }
 0x1b8   : > { %1772 = vrcp.f32 %v651_v2  ;;  %v604_v13 = vmul.f32 0.3275911, %v2641_v32  ;;  %v1241_v35 = vsel %vm1177_vm9, %v1145_v61, %v1209_v62  ;;  %v1003_v8 = vsub.f32 0.0, %v587_v37 }
 0x1b9   : > { %v2633_v21 = vpop.eup %1764  ;;  %v890_v15 = vmul.f32 %v1761_v45, %v858_v56  ;;  %v620_v43 = vmul.f32 0.3275911, %v2644_v44  ;;  %1774 = vpow2.f32 %v1095_v54  ;;  %v1065_v6 = vmul.f32 1.442695, %v1019_v51 }
 0x1ba   : > { %v714_v39 = vmul.f32 1.0614054, %v2633_v21  ;;  %v1767_v40 = vpop.eup %1766  ;;  %v636_v22 = vadd.f32 1.0, %v604_v13  ;;  %v1305_v33 = vadd.f32 1.0, %v1241_v35  ;;  %v1035_v55 = vmul.f32 %v1003_v8, %v587_v37 }
 0x1bb   : > { %v922_v34 = vadd.f32 0.2548296, %v890_v15  ;;  %v1129_v49 = vmul.f32 %v1767_v40, %v969_v50  ;;  %v652_v16 = vadd.f32 1.0, %v620_v43  ;;  %v1273_v60 = vmul.f32 0.5, %v2484_v38 }
 0x1bc   : > { %v746_v29 = vadd.f32 -1.4531521, %v714_v39  ;;  %v2646_v4 = vpop.eup %1768  ;;  %1776 = vrcp.f32 %v636_v22  ;;  %vm1178_vm10 = vcmp.ge.f32.partialorder %v2556_v5, 0.0  ;;  %v1274_v7 = vmul.f32 0.5, %v2543_v28 }
 0x1bd   : > { %v954_v30 = vmul.f32 %v1761_v45, %v922_v34  ;;  %v1771_v0 = vpop.eup %1770  ;;  %v699_v17 = vmul.f32 1.0614054, %v2646_v4  ;;  %1778 = vrcp.f32 %v652_v16  ;;  %v1161_v57 = vsub.f32 1.0, %v1129_v49 }
 0x1be   : > { %v778_v18 = vmul.f32 %v2633_v21, %v746_v29  ;;  %1780 = vpow2.f32 %v1065_v6  ;;  %v1337_v12 = vmul.f32 %v1305_v33, %v1273_v60  ;;  %v1097_v15 = vmul.f32 1.442695, %v1035_v55 }
 0x1bf   : > { %v1114_v26 = vmul.f32 %v1771_v0, %v954_v30  ;;  %v731_v19 = vadd.f32 -1.4531521, %v699_v17  ;;  %v1225_v47 = vsub.f32 0.0, %v1161_v57  ;;  %v988_v38 = vsub.f32 0.0, %v2641_v32 }
 0x1c0   : > { %v810_v24 = vadd.f32 1.4214138, %v778_v18  ;;  %v1004_v28 = vsub.f32 0.0, %v2644_v44  ;;  %vm1193_vm11 = vcmp.ge.f32.partialorder %v2500_v3, 0.0  ;;  %1782 = vpow2.f32 %v1097_v15 }
 0x1c1   : > { %v1146_v45 = vsub.f32 1.0, %v1114_v26  ;;  %v763_v58 = vmul.f32 %v2646_v4, %v731_v19  ;;  %v1257_v30 = vsel %vm1193_vm11, %v1161_v57, %v1225_v47  ;;  %v1020_v13 = vmul.f32 %v988_v38, %v2641_v32 }
 0x1c2   : > { %v842_v1 = vmul.f32 %v2633_v21, %v810_v24  ;;  %v2655_v10 = vpop.eup %1772  ;;  %v1036_v43 = vmul.f32 %v1004_v28, %v2644_v44  ;;  %v1321_v26 = vadd.f32 1.0, %v1257_v30  ;;  %v1289_v32 = vmul.f32 0.5, %v2488_v9 }
 0x1c3   : > { %v1210_v52 = vsub.f32 0.0, %v1146_v45  ;;  %v795_v41 = vadd.f32 1.4214138, %v763_v58  ;;  %v715_v53 = vmul.f32 1.0614054, %v2655_v10  ;;  %v1775_v62 = vpop.eup %1774  ;;  %vm1194_vm12 = vcmp.ge.f32.partialorder %v2592_v46, 0.0 }
 0x1c4   : > { %v874_v11 = vadd.f32 -0.28449672, %v842_v1  ;;  %v1067_v16 = vmul.f32 1.442695, %v1020_v13  ;;  %v1099_v1 = vmul.f32 1.442695, %v1036_v43 }
 0x1c5   : > { %v1242_v20 = vsel %vm1178_vm10, %v1146_v45, %v1210_v52  ;;  %v827_v37 = vmul.f32 %v2646_v4, %v795_v41  ;;  %v747_v2 = vadd.f32 -1.4531521, %v715_v53  ;;  %v1290_v44 = vmul.f32 0.5, %v2581_v48 }
 0x1c6   : > { %v1306_v61 = vadd.f32 1.0, %v1242_v20  ;;  %v906_v56 = vmul.f32 %v2633_v21, %v874_v11  ;;  %v1777_v54 = vpop.eup %1776  ;;  %v1353_v52 = vmul.f32 %v1321_v26, %v1289_v32  ;;  %1784 = vpow2.f32 %v1067_v16 }
 0x1c7   : > { %v859_v50 = vadd.f32 -0.28449672, %v827_v37  ;;  %v779_v39 = vmul.f32 %v2655_v10, %v747_v2  ;;  %v1779_v0 = vpop.eup %1778  ;;  %v700_v17 = vmul.f32 1.0614054, %v1777_v54  ;;  %1786 = vpow2.f32 %v1099_v1 }
 0x1c8   : > { %v1338_v5 = vmul.f32 %v1306_v61, %v1274_v7  ;;  %v938_v36 = vadd.f32 0.2548296, %v906_v56  ;;  %v716_v35 = vmul.f32 1.0614054, %v1779_v0  ;;  %v1781_v24 = vpop.eup %1780  ;;  %vm1179_vm13 = vcmp.ge.f32.partialorder %v2606_v25, 0.0 }
 0x1c9   : > { %v891_v29 = vmul.f32 %v2646_v4, %v859_v50  ;;  %v811_v51 = vadd.f32 1.4214138, %v779_v39  ;;  %v732_v22 = vadd.f32 -1.4531521, %v700_v17  ;;  %vm1195_vm14 = vcmp.ge.f32.partialorder %v2619_v14, 0.0 }
 0x1ca   : > { %v1607_v34 = vpack.c.bf16 %v1338_v5, %v1337_v12  ;;  %v970_v40 = vmul.f32 %v2633_v21, %v938_v36  ;;  %v748_v45 = vadd.f32 -1.4531521, %v716_v35  ;;  %v1783_v7 = vpop.eup %1782  ;;  %vm1180_vm15 = vcmp.ge.f32.partialorder %v2631_v59, 0.0 }
 0x1cb   : > { %v923_v18 = vadd.f32 0.2548296, %v891_v29  ;;  %v843_v3 = vmul.f32 %v2655_v10, %v811_v51  ;;  %v764_v33 = vmul.f32 %v1777_v54, %v732_v22  ;;  %v1291_v25 = vmul.f32 0.5, %v2614_v27 }
 0x1cc   : > { %1459 = vst [vmem:[%s2186_s26 + $0x30] sm:$0xff] %v1607_v34  ;;  %v1130_v49 = vmul.f32 %v1775_v62, %v970_v40  ;;  %v780_v57 = vmul.f32 %v1779_v0, %v748_v45  ;;  %vm1196_vm0 = vcmp.ge.f32.partialorder %v2636_v23, 0.0  ;;  %v1276_v35 = vmul.f32 0.5, %v2625_v42 }
 0x1cd   : > { %v955_v8 = vmul.f32 %v2646_v4, %v923_v18  ;;  %v875_v19 = vadd.f32 -0.28449672, %v843_v3  ;;  %v796_v60 = vadd.f32 1.4214138, %v764_v33  ;;  %v1275_v3 = vmul.f32 0.5, %v2597_v31 }
 0x1ce   : > { %v1162_v21 = vsub.f32 1.0, %v1130_v49  ;;  %v812_v20 = vadd.f32 1.4214138, %v780_v57  ;;  %v1292_v22 = vmul.f32 0.5, %v2628_v63 }
 0x1cf   : > { %v907_v58 = vmul.f32 %v2655_v10, %v875_v19  ;;  %v1115_v4 = vmul.f32 %v1781_v24, %v955_v8  ;;  %v828_v9 = vmul.f32 %v1777_v54, %v796_v60 }
 0x1d0   : > { %v1226_v6 = vsub.f32 0.0, %v1162_v21  ;;  %v844_v12 = vmul.f32 %v1779_v0, %v812_v20  ;;  %v1785_v62 = vpop.eup %1784 }
 0x1d1   : > { %v939_v41 = vadd.f32 0.2548296, %v907_v58  ;;  %v1147_v48 = vsub.f32 1.0, %v1115_v4  ;;  %v860_v61 = vadd.f32 -0.28449672, %v828_v9 }
 0x1d2   : > { %v1258_v55 = vsel %vm1194_vm12, %v1162_v21, %v1226_v6  ;;  %v876_v47 = vadd.f32 -0.28449672, %v844_v12 }
 0x1d3   : > { %v1322_v11 = vadd.f32 1.0, %v1258_v55  ;;  %v971_v46 = vmul.f32 %v2655_v10, %v939_v41  ;;  %v892_v2 = vmul.f32 %v1777_v54, %v860_v61  ;;  %v1211_v5 = vsub.f32 0.0, %v1147_v48  ;;  %v1787_v10 = vpop.eup %1786 }
 0x1d4   : > { %v908_v38 = vmul.f32 %v1779_v0, %v876_v47 }
 0x1d5   : > { %v1354_v53 = vmul.f32 %v1322_v11, %v1290_v44  ;;  %v1131_v37 = vmul.f32 %v1783_v7, %v971_v46  ;;  %v924_v36 = vadd.f32 0.2548296, %v892_v2  ;;  %v1243_v40 = vsel %vm1179_vm13, %v1147_v48, %v1211_v5 }
 0x1d6   : > { %v940_v28 = vadd.f32 0.2548296, %v908_v38  ;;  %v1307_v49 = vadd.f32 1.0, %v1243_v40 }
 0x1d7   : > { %v1615_v56 = vpack.c.bf16 %v1354_v53, %v1353_v52  ;;  %v1163_v15 = vsub.f32 1.0, %v1131_v37  ;;  %v956_v39 = vmul.f32 %v1777_v54, %v924_v36 }
 0x1d8   : > { %v972_v34 = vmul.f32 %v1779_v0, %v940_v28  ;;  %v1339_v14 = vmul.f32 %v1307_v49, %v1275_v3 }
 0x1d9   : > { %1467 = vst [vmem:[%s2186_s26 + $0x70] sm:$0xff] %v1615_v56  ;;  %v1227_v50 = vsub.f32 0.0, %v1163_v15  ;;  %v1116_v29 = vmul.f32 %v1785_v62, %v956_v39 }
 0x1da   : > { %v1132_v51 = vmul.f32 %v1787_v10, %v972_v34 }
 0x1db   : > { %v1259_v30 = vsel %vm1195_vm14, %v1163_v15, %v1227_v50  ;;  %v1148_v13 = vsub.f32 1.0, %v1116_v29 }
 0x1dc   : > { %v1164_v18 = vsub.f32 1.0, %v1132_v51  ;;  %v1323_v17 = vadd.f32 1.0, %v1259_v30 }
 0x1dd   : > { %v1212_v43 = vsub.f32 0.0, %v1148_v13 }
 0x1de   : > { %v1228_v54 = vsub.f32 0.0, %v1164_v18  ;;  %v1355_v8 = vmul.f32 %v1323_v17, %v1291_v25 }
 0x1df   : > { %v1244_v0 = vsel %vm1180_vm15, %v1148_v13, %v1212_v43 }
 0x1e0   : > { %v1308_v26 = vadd.f32 1.0, %v1244_v0  ;;  %v1260_v21 = vsel %vm1196_vm0, %v1164_v18, %v1228_v54 }
 0x1e1   : > { %v1324_v24 = vadd.f32 1.0, %v1260_v21 }
 0x1e2   : > { %v1340_v31 = vmul.f32 %v1308_v26, %v1276_v35 }
 0x1e3   : > { %v1356_v19 = vmul.f32 %v1324_v24, %v1292_v22 }
 0x1e4   : > { %v1608_v59 = vpack.c.bf16 %v1340_v31, %v1339_v14 }
 0x1e5   : > { %v1616_v16 = vpack.c.bf16 %v1356_v19, %v1355_v8 }
 0x1e6   : > { %1460 = vst [vmem:[%s2186_s26 + $0x38] sm:$0xff] %v1608_v59 }
 0x1e7   : > { %1468 = vst [vmem:[%s2186_s26 + $0x78] sm:$0xff] %v1616_v16 }
 0x1e8 PF: > { %s13_s14 = sadd.s32 1, %s1810_s14   ;;  %s2736_s12 = smov %s1806_s13 }
 0x1e9   : > { %p10_p5 = scmp.ge.s32.totalorder %s13_s14, 4   ;;  %s2737_s13 = smov %s2739_s15 }
 0x1eb   :  { %12 = sbr.rel (!%p10_p5) target bundleno = 2 (0x2), region = 62 }

</bundles_post_ra>
